<compile_context>
chip_gen: v7x
topology: tpu7x:2x2x1
jax: 0.10.0
libtpu: 0.0.40
codegen_flags: <defaults>
</compile_context>

<pallas_src>
import functools
import math

import jax
import jax.numpy as jnp
from jax.experimental import pallas as pl
from jax.experimental.pallas import tpu as pltpu


_SEQ_TILE = 256       # sequence tile for qkv / proj+MLP / ln_f / head kernels
_ATTN_TILE = 128      # query/KV tile for flash attention
_VOCAB_TILE = 2048    # vocab tile for the LM head (multiple of 128)


def _default_vmem_limit():
    cap = 64 * 1024 * 1024
    try:
        info = pltpu.get_tpu_info()
        cap = int(getattr(info, "vmem_capacity_bytes", cap) or cap)
    except Exception:
        pass
    # ~3/4 of physical (96 MiB on v5e/v6e, 48 MiB on v7x), never below 32 MiB.
    return min(96 * 1024 * 1024, max(32 * 1024 * 1024, (cap * 3) // 4))


_VMEM_LIMIT = _default_vmem_limit()


# ---------------------------------------------------------------------------
# shared helpers
# ---------------------------------------------------------------------------
def _layernorm(h, w, b, eps=1e-5):
    mu = jnp.mean(h, axis=-1, keepdims=True)
    var = jnp.mean(jnp.square(h - mu), axis=-1, keepdims=True)
    return (h - mu) * jax.lax.rsqrt(var + eps) * w + b


def _const_spec(a):
    """Full-array block with a constant index map (weight stays resident)."""
    n = a.ndim
    return pl.BlockSpec(a.shape, lambda *_, n=n: (0,) * n)


def _tile(T, t_max):
    t = T if T <= t_max else t_max
    # TODO(synk): ragged sequence lengths (T not a multiple of the tile) are not handled.
    assert T % t == 0, f"T={T} must be a multiple of the tile {t}"
    return t


def _heads_per_step(n_head, hd):
    """Smallest head group whose lane width is a multiple of 128 (or full D)."""
    if hd % 128 == 0:
        return 1
    g = 128 // math.gcd(hd, 128)
    if g <= n_head and n_head % g == 0:
        return g
    return n_head


# ---------------------------------------------------------------------------
# 1) LayerNorm + QKV projection: (B, T, D) bf16 -> q, k, v each (B, T, D) bf16
#    (lane-dense full-width stores; head split happens via flash BlockSpecs)
# ---------------------------------------------------------------------------
def _qkv_kernel(x_ref, ln1w, ln1b, wqkv, bqkv, q_ref, k_ref, v_ref):
    D = x_ref.shape[2]
    x = x_ref[0].astype(jnp.float32)                       # (tq, D)
    h = _layernorm(x, ln1w[...], ln1b[...])                # f32 elementwise math
    qkv = jnp.dot(h.astype(jnp.bfloat16), wqkv[...],       # bf16 MXU, f32 accumulate
                  preferred_element_type=jnp.float32) + bqkv[...]
    q_ref[0] = qkv[:, :D].astype(q_ref.dtype)              # full-width lane-dense stores
    k_ref[0] = qkv[:, D:2 * D].astype(k_ref.dtype)
    v_ref[0] = qkv[:, 2 * D:].astype(v_ref.dtype)


def _qkv_proj(x, p, tq):
    B, T, D = x.shape
    spec = pl.BlockSpec((1, tq, D), lambda b, qi: (b, qi, 0))
    out_shape = jax.ShapeDtypeStruct((B, T, D), jnp.bfloat16)
    return pl.pallas_call(
        _qkv_kernel,
        out_shape=(out_shape, out_shape, out_shape),
        grid=(B, T // tq),
        in_specs=[spec,
                  _const_spec(p["ln1_w"]), _const_spec(p["ln1_b"]),
                  _const_spec(p["w_qkv"]), _const_spec(p["b_qkv"])],
        out_specs=(spec, spec, spec),
        compiler_params=pltpu.CompilerParams(
            dimension_semantics=("parallel", "parallel"),
            vmem_limit_bytes=_VMEM_LIMIT),
    )(x, p["ln1_w"], p["ln1_b"], p["w_qkv"], p["b_qkv"])


# ---------------------------------------------------------------------------
# 2) causal flash attention over head groups (online softmax over KV tiles)
#    q/k/v/o arrays are (B, T, D); each grid step handles one 128-lane head
#    group; K/V blocks stay resident across the innermost query-tile axis.
# ---------------------------------------------------------------------------
def _flash_kernel(q_ref, k_ref, v_ref, o_ref, *, head_dim):
    ta, G = q_ref.shape[1], q_ref.shape[2]
    hps = G // head_dim
    tk = ta
    scale = 1.0 / math.sqrt(head_dim)
    qi = pl.program_id(2)

    # fold the softmax scale into q once (outside the KV loop)
    q_all = q_ref[0]                                       # (ta, G) bf16
    q_heads = [
        (q_all[:, i * head_dim:(i + 1) * head_dim].astype(jnp.float32)
         * scale).astype(jnp.bfloat16)
        for i in range(hps)
    ]

    def tile_update(carry, start, mask):
        kt = k_ref[0, pl.ds(start, tk), :]                 # (tk, G) bf16
        vt = v_ref[0, pl.ds(start, tk), :]
        new = []
        for i in range(hps):
            m_i, l_i, acc = carry[i]
            k_h = kt[:, i * head_dim:(i + 1) * head_dim]
            v_h = vt[:, i * head_dim:(i + 1) * head_dim]
            s = jax.lax.dot_general(q_heads[i], k_h, (((1,), (1,)), ((), ())),
                                    preferred_element_type=jnp.float32)
            if mask is not None:
                s = jnp.where(mask, s, jnp.float32(-1e30))
            m_new = jnp.maximum(m_i, jnp.max(s, axis=-1, keepdims=True))
            p = jnp.exp(s - m_new)
            alpha = jnp.exp(m_i - m_new)
            l_new = alpha * l_i + jnp.sum(p, axis=-1, keepdims=True)
            acc_new = alpha * acc + jnp.dot(p.astype(jnp.bfloat16), v_h,
                                            preferred_element_type=jnp.float32)
            new.append((m_new, l_new, acc_new))
        return tuple(new)

    m0 = jnp.full((ta, 1), -1e30, jnp.float32)
    l0 = jnp.zeros((ta, 1), jnp.float32)
    a0 = jnp.zeros((ta, head_dim), jnp.float32)
    carry0 = tuple((m0, l0, a0) for _ in range(hps))

    # full (unmasked) KV tiles strictly below the diagonal tile
    def body(kv, carry):
        return tile_update(carry, pl.multiple_of(kv * tk, tk), None)
    carry = jax.lax.fori_loop(0, qi, body, carry0)

    # diagonal tile: local lower-triangular mask (diagonal row always unmasked)
    tri = (jax.lax.broadcasted_iota(jnp.int32, (ta, tk), 0)
           >= jax.lax.broadcasted_iota(jnp.int32, (ta, tk), 1))
    carry = tile_update(carry, pl.multiple_of(qi * tk, tk), tri)

    outs = [(acc * pl.reciprocal(l_f, approx=True)).astype(o_ref.dtype)
            for (_, l_f, acc) in carry]
    o_ref[0] = outs[0] if hps == 1 else jnp.concatenate(outs, axis=1)


def _flash_attention(q, k, v, n_head, ta):
    B, T, D = q.shape
    hd = D // n_head
    hps = _heads_per_step(n_head, hd)
    G = hps * hd
    # TODO(synk): for very long T, K/V full-length residency should switch to a
    # KV-tile grid axis / manual double-buffered DMA (v7x 64 MiB VMEM).
    kernel = functools.partial(_flash_kernel, head_dim=hd)
    return pl.pallas_call(
        kernel,
        out_shape=jax.ShapeDtypeStruct((B, T, D), jnp.bfloat16),
        grid=(B, n_head // hps, T // ta),
        in_specs=[pl.BlockSpec((1, ta, G), lambda b, g, qi: (b, qi, g)),
                  pl.BlockSpec((1, T, G), lambda b, g, qi: (b, 0, g)),
                  pl.BlockSpec((1, T, G), lambda b, g, qi: (b, 0, g))],
        out_specs=pl.BlockSpec((1, ta, G), lambda b, g, qi: (b, qi, g)),
        compiler_params=pltpu.CompilerParams(
            dimension_semantics=("parallel", "parallel", "parallel"),
            vmem_limit_bytes=_VMEM_LIMIT),
    )(q, k, v)


# ---------------------------------------------------------------------------
# 3) output projection + residual + ln2 + GELU MLP + residual
#    (attention input is already a lane-dense (B, T, D) slab: no head merge)
# ---------------------------------------------------------------------------
def _proj_mlp_kernel(x_ref, att_ref, wproj, bproj, ln2w, ln2b,
                     wfc, bfc, wfc2, bfc2, o_ref):
    y = jnp.dot(att_ref[0], wproj[...],
                preferred_element_type=jnp.float32) + bproj[...]
    x = x_ref[0].astype(jnp.float32) + y                   # residual (dropout == identity)
    h = _layernorm(x, ln2w[...], ln2b[...])
    m = jnp.dot(h.astype(jnp.bfloat16), wfc[...],
                preferred_element_type=jnp.float32) + bfc[...]
    g = jax.nn.gelu(m, approximate=True)                   # GPT-2 tanh GELU, f32
    z = jnp.dot(g.astype(jnp.bfloat16), wfc2[...],
                preferred_element_type=jnp.float32) + bfc2[...]
    o_ref[0] = (x + z).astype(o_ref.dtype)                 # residual (dropout == identity)


def _proj_mlp(x, att, p, tq):
    B, T, D = x.shape
    spec = pl.BlockSpec((1, tq, D), lambda b, qi: (b, qi, 0))
    weights = [p["w_proj"], p["b_proj"], p["ln2_w"], p["ln2_b"],
               p["w_fc"], p["b_fc"], p["w_fc2"], p["b_fc2"]]
    # TODO(synk): on v7x with D >= 1024 the resident MLP weights should be
    # single-buffered (pl.Buffered(1)) or the MLP split into its own call.
    return pl.pallas_call(
        _proj_mlp_kernel,
        out_shape=jax.ShapeDtypeStruct((B, T, D), jnp.bfloat16),
        grid=(B, T // tq),
        in_specs=[spec, spec] + [_const_spec(a) for a in weights],
        out_specs=spec,
        compiler_params=pltpu.CompilerParams(
            dimension_semantics=("parallel", "parallel"),
            vmem_limit_bytes=_VMEM_LIMIT),
    )(x, att, *weights)


def transformer_block(x, p, n_head, tq, ta):
    q, k, v = _qkv_proj(x, p, tq)
    att = _flash_attention(q, k, v, n_head, ta)
    return _proj_mlp(x, att, p, tq)


# ---------------------------------------------------------------------------
# final LayerNorm + tied LM head (vocab tile OUTERMOST: weight streamed once)
# ---------------------------------------------------------------------------
def _lnf_kernel(x_ref, lnw, lnb, o_ref):
    h = _layernorm(x_ref[0].astype(jnp.float32), lnw[...], lnb[...])
    o_ref[0] = h.astype(o_ref.dtype)


def _head_kernel(x_ref, w_ref, o_ref):
    o_ref[0] = jnp.dot(x_ref[0], w_ref[...],
                       preferred_element_type=jnp.float32).astype(o_ref.dtype)


def lm_head(x, lnf_w, lnf_b, head_w, vocab):
    B, T, D = x.shape
    vp = head_w.shape[1]
    tq = _tile(T, _SEQ_TILE)
    tv = vp if vp <= _VOCAB_TILE else _VOCAB_TILE

    # ln_f once (bf16 out) so it is not recomputed per vocab tile
    xf = pl.pallas_call(
        _lnf_kernel,
        out_shape=jax.ShapeDtypeStruct((B, T, D), jnp.bfloat16),
        grid=(B, T // tq),
        in_specs=[pl.BlockSpec((1, tq, D), lambda b, qi: (b, qi, 0)),
                  _const_spec(lnf_w), _const_spec(lnf_b)],
        out_specs=pl.BlockSpec((1, tq, D), lambda b, qi: (b, qi, 0)),
        compiler_params=pltpu.CompilerParams(
            dimension_semantics=("parallel", "parallel"),
            vmem_limit_bytes=_VMEM_LIMIT),
    )(x, lnf_w, lnf_b)

    # vocab-tile axis outermost: the weight block index only changes on the
    # outer axis, so the tied head matrix is streamed from HBM exactly once.
    logits = pl.pallas_call(
        _head_kernel,
        out_shape=jax.ShapeDtypeStruct((B, T, vp), jnp.float32),
        grid=(vp // tv, B, T // tq),
        in_specs=[pl.BlockSpec((1, tq, D), lambda vi, b, qi: (b, qi, 0)),
                  pl.BlockSpec((D, tv), lambda vi, b, qi: (0, vi))],
        out_specs=pl.BlockSpec((1, tq, tv), lambda vi, b, qi: (b, qi, vi)),
        compiler_params=pltpu.CompilerParams(
            dimension_semantics=("parallel", "parallel", "parallel"),
            vmem_limit_bytes=_VMEM_LIMIT),
    )(xf, head_w)
    return logits[..., :vocab] if vp != vocab else logits


# ---------------------------------------------------------------------------
# one-time parameter preparation (outside the jitted forward):
# bf16 casts of all MXU weights + transposed / padded tied head weight
# ---------------------------------------------------------------------------
def prepare_params(params):
    bf = jnp.bfloat16
    V, D = params["wte"].shape
    head_w = params["wte"].T.astype(bf)                    # (D, V) bf16
    if V > _VOCAB_TILE:
        vp = ((V + _VOCAB_TILE - 1) // _VOCAB_TILE) * _VOCAB_TILE
        if vp != V:
            head_w = jnp.pad(head_w, ((0, 0), (0, vp - V)))
    prep = {
        "wte": params["wte"], "wpe": params["wpe"],
        "lnf_w": params["lnf_w"], "lnf_b": params["lnf_b"],
        "head_w": head_w,
        "blocks": [],
    }
    for b in params["blocks"]:
        prep["blocks"].append({
            "ln1_w": b["ln1_w"], "ln1_b": b["ln1_b"],
            "w_qkv": b["w_qkv"].astype(bf), "b_qkv": b["b_qkv"],
            "w_proj": b["w_proj"].astype(bf), "b_proj": b["b_proj"],
            "ln2_w": b["ln2_w"], "ln2_b": b["ln2_b"],
            "w_fc": b["w_fc"].astype(bf), "b_fc": b["b_fc"],
            "w_fc2": b["w_fc2"].astype(bf), "b_fc2": b["b_fc2"],
        })
    return prep


# ---------------------------------------------------------------------------
# full model forward (glue: embedding gathers + positional add in plain JAX)
# ---------------------------------------------------------------------------
def mini_gpt2_forward(idx, prep, n_head):
    B, T = idx.shape
    tok_emb = prep["wte"][idx]                             # (B, T, D) gather
    pos_emb = prep["wpe"][:T][None, :, :]                  # (1, T, D)
    x = (tok_emb + pos_emb).astype(jnp.bfloat16)           # bf16 residual stream
    tq = _tile(T, _SEQ_TILE)
    ta = _tile(T, _ATTN_TILE)
    for bp in prep["blocks"]:
        x = transformer_block(x, bp, n_head, tq, ta)
    return lm_head(x, prep["lnf_w"], prep["lnf_b"], prep["head_w"],
                   prep["wte"].shape[0])


# ---------------------------------------------------------------------------
# pure-JAX reference mirroring the kernel's precision policy (bf16 residual
# stream, bf16 MXU operands, f32 accumulation / elementwise)
# ---------------------------------------------------------------------------
def ref_forward(idx, params, n_head):
    bf16, f32 = jnp.bfloat16, jnp.float32

    def ln(h, w, b):
        h = h.astype(f32)
        mu = jnp.mean(h, -1, keepdims=True)
        var = jnp.mean((h - mu) ** 2, -1, keepdims=True)
        return (h - mu) / jnp.sqrt(var + 1e-5) * w + b

    def mm(a, w):
        return jnp.dot(a.astype(bf16), w.astype(bf16), preferred_element_type=f32)

    B, T = idx.shape
    D = params["wte"].shape[1]
    hd = D // n_head
    scale = 1.0 / math.sqrt(hd)
    x = (params["wte"][idx] + params["wpe"][:T][None]).astype(bf16)
    causal = jnp.tril(jnp.ones((T, T), bool))
    for p in params["blocks"]:
        h = ln(x, p["ln1_w"], p["ln1_b"])
        qkv = mm(h, p["w_qkv"]) + p["b_qkv"]
        q, k, v = qkv[..., :D], qkv[..., D:2 * D], qkv[..., 2 * D:]
        q = q.astype(bf16).reshape(B, T, n_head, hd).transpose(0, 2, 1, 3)
        k = k.astype(bf16).reshape(B, T, n_head, hd).transpose(0, 2, 1, 3)
        v = v.astype(bf16).reshape(B, T, n_head, hd).transpose(0, 2, 1, 3)
        qs = (q.astype(f32) * scale).astype(bf16)
        s = jnp.einsum("bhqd,bhkd->bhqk", qs, k, preferred_element_type=f32)
        s = jnp.where(causal, s, -1e30)
        a = jax.nn.softmax(s, axis=-1)
        o = jnp.einsum("bhqk,bhkd->bhqd", a.astype(bf16), v,
                       preferred_element_type=f32)
        o = o.transpose(0, 2, 1, 3).reshape(B, T, D).astype(bf16)
        xf = x.astype(f32) + (mm(o, p["w_proj"]) + p["b_proj"])
        h2 = ln(xf, p["ln2_w"], p["ln2_b"])
        g = jax.nn.gelu(mm(h2, p["w_fc"]) + p["b_fc"], approximate=True)
        x = (xf + (mm(g, p["w_fc2"]) + p["b_fc2"])).astype(bf16)
    xo = ln(x, params["lnf_w"], params["lnf_b"])
    return mm(xo, params["wte"].T)


# ---------------------------------------------------------------------------
# deterministic parameter init (synthetic, shapes implied by the module)
# ---------------------------------------------------------------------------
def init_params(key, vocab, max_pos, D, n_layer):
    keys = jax.random.split(key, 2 + 6 * n_layer)
    k_iter = iter(keys)
    std = 0.02
    params = {
        "wte": jax.random.normal(next(k_iter), (vocab, D), jnp.float32) * std,
        "wpe": jax.random.normal(next(k_iter), (max_pos, D), jnp.float32) * std,
        "lnf_w": jnp.ones((1, D), jnp.float32),
        "lnf_b": jnp.zeros((1, D), jnp.float32),
        "blocks": [],
    }
    for _ in range(n_layer):
        blk = {
            "ln1_w": jnp.ones((1, D), jnp.float32),
            "ln1_b": jnp.zeros((1, D), jnp.float32),
            "w_qkv": jax.random.normal(next(k_iter), (D, 3 * D), jnp.float32) * std,
            "b_qkv": jnp.zeros((1, 3 * D), jnp.float32),
            "w_proj": jax.random.normal(next(k_iter), (D, D), jnp.float32) * std,
            "b_proj": jnp.zeros((1, D), jnp.float32),
            "ln2_w": jnp.ones((1, D), jnp.float32),
            "ln2_b": jnp.zeros((1, D), jnp.float32),
            "w_fc": jax.random.normal(next(k_iter), (D, 4 * D), jnp.float32) * std,
            "b_fc": jnp.zeros((1, 4 * D), jnp.float32),
            "w_fc2": jax.random.normal(next(k_iter), (4 * D, D), jnp.float32) * std,
            "b_fc2": jnp.zeros((1, D), jnp.float32),
        }
        params["blocks"].append(blk)
        next(k_iter); next(k_iter)   # consume remaining split keys deterministically
    return params


if __name__ == "__main__":
    # small config consistent with the module's forward
    B, T = 2, 8
    VOCAB, D, N_HEAD, N_LAYER, MAX_POS = 64, 32, 4, 2, 16

    key = jax.random.PRNGKey(0)
    k_params, k_idx = jax.random.split(key)
    params = init_params(k_params, VOCAB, MAX_POS, D, N_LAYER)
    prep = prepare_params(params)            # one-time weight prep (outside jit)
    idx = jax.random.randint(k_idx, (B, T), 0, VOCAB, dtype=jnp.int32)

    fwd = jax.jit(functools.partial(mini_gpt2_forward, n_head=N_HEAD))
    logits = jax.block_until_ready(fwd(idx, prep))
    assert logits.shape == (B, T, VOCAB), logits.shape

    ref = jax.block_until_ready(ref_forward(idx, params, N_HEAD))
    max_err = float(jnp.max(jnp.abs(logits - ref)))
    assert jnp.allclose(logits, ref, atol=1e-2, rtol=1e-2), max_err

    print("KERNEL_OK")
</pallas_src>

<mosaic_0001>
module attributes {stable_mosaic.version = 11 : i64} {
  func.func @_qkv_kernel(%arg0: i32, %arg1: i32, %arg2: memref<1x8x32xbf16, #tpu.memory_space<vmem>>, %arg3: memref<1x32xf32, #tpu.memory_space<vmem>>, %arg4: memref<1x32xf32, #tpu.memory_space<vmem>>, %arg5: memref<32x96xbf16, #tpu.memory_space<vmem>>, %arg6: memref<1x96xf32, #tpu.memory_space<vmem>>, %arg7: memref<1x8x32xbf16, #tpu.memory_space<vmem>>, %arg8: memref<1x8x32xbf16, #tpu.memory_space<vmem>>, %arg9: memref<1x8x32xbf16, #tpu.memory_space<vmem>>) attributes {dimension_semantics = [#tpu.dimension_semantics<parallel>, #tpu.dimension_semantics<parallel>], iteration_bounds = array<i64: 2, 1>, scalar_prefetch = 0 : i64, scratch_operands = 0 : i64, tpu.core_type = #tpu.core_type<tc>, window_params = [{transform_indices = @transform_0, window_bounds = array<i64: 1, 8, 32>}, {pipeline_mode = #tpu.pipeline_mode<synchronous>, transform_indices = @transform_1, window_bounds = array<i64: 1, 32>}, {pipeline_mode = #tpu.pipeline_mode<synchronous>, transform_indices = @transform_2, window_bounds = array<i64: 1, 32>}, {pipeline_mode = #tpu.pipeline_mode<synchronous>, transform_indices = @transform_3, window_bounds = array<i64: 32, 96>}, {pipeline_mode = #tpu.pipeline_mode<synchronous>, transform_indices = @transform_4, window_bounds = array<i64: 1, 96>}, {transform_indices = @transform_5, window_bounds = array<i64: 1, 8, 32>}, {transform_indices = @transform_6, window_bounds = array<i64: 1, 8, 32>}, {transform_indices = @transform_7, window_bounds = array<i64: 1, 8, 32>}]} {
    %c0 = arith.constant 0 : index
    %c0_0 = arith.constant 0 : index
    %c0_1 = arith.constant 0 : index
    %0 = vector.load %arg2[%c0, %c0_0, %c0_1] : memref<1x8x32xbf16, #tpu.memory_space<vmem>>, vector<1x8x32xbf16>
    %1 = vector.shape_cast %0 : vector<1x8x32xbf16> to vector<8x32xbf16>
    %2 = arith.extf %1 : vector<8x32xbf16> to vector<8x32xf32>
    %c0_2 = arith.constant 0 : index
    %c0_3 = arith.constant 0 : index
    %3 = vector.load %arg3[%c0_2, %c0_3] : memref<1x32xf32, #tpu.memory_space<vmem>>, vector<1x32xf32>
    %c0_4 = arith.constant 0 : index
    %c0_5 = arith.constant 0 : index
    %4 = vector.load %arg4[%c0_4, %c0_5] : memref<1x32xf32, #tpu.memory_space<vmem>>, vector<1x32xf32>
    %cst = arith.constant dense<0.000000e+00> : vector<8xf32>
    %5 = vector.multi_reduction <add>, %2, %cst [1] : vector<8x32xf32> to vector<8xf32>
    %6 = vector.shape_cast %5 : vector<8xf32> to vector<8x1xf32>
    %cst_6 = arith.constant 3.200000e+01 : f32
    %7 = vector.broadcast %cst_6 : f32 to vector<8x1xf32>
    %8 = arith.divf %6, %7 : vector<8x1xf32>
    %9 = vector.broadcast %8 : vector<8x1xf32> to vector<8x32xf32>
    %10 = arith.subf %2, %9 : vector<8x32xf32>
    %11 = arith.mulf %10, %10 : vector<8x32xf32>
    %cst_7 = arith.constant dense<0.000000e+00> : vector<8xf32>
    %12 = vector.multi_reduction <add>, %11, %cst_7 [1] : vector<8x32xf32> to vector<8xf32>
    %13 = vector.shape_cast %12 : vector<8xf32> to vector<8x1xf32>
    %cst_8 = arith.constant 3.200000e+01 : f32
    %14 = vector.broadcast %cst_8 : f32 to vector<8x1xf32>
    %15 = arith.divf %13, %14 : vector<8x1xf32>
    %16 = vector.broadcast %8 : vector<8x1xf32> to vector<8x32xf32>
    %17 = arith.subf %2, %16 : vector<8x32xf32>
    %cst_9 = arith.constant 9.99999974E-6 : f32
    %18 = vector.broadcast %cst_9 : f32 to vector<8x1xf32>
    %19 = arith.addf %15, %18 : vector<8x1xf32>
    %20 = math.rsqrt %19 : vector<8x1xf32>
    %21 = vector.broadcast %20 : vector<8x1xf32> to vector<8x32xf32>
    %22 = arith.mulf %17, %21 : vector<8x32xf32>
    %23 = vector.broadcast %3 : vector<1x32xf32> to vector<8x32xf32>
    %24 = arith.mulf %22, %23 : vector<8x32xf32>
    %25 = vector.broadcast %4 : vector<1x32xf32> to vector<8x32xf32>
    %26 = arith.addf %24, %25 : vector<8x32xf32>
    %27 = arith.truncf %26 : vector<8x32xf32> to vector<8x32xbf16>
    %c0_10 = arith.constant 0 : index
    %c0_11 = arith.constant 0 : index
    %28 = vector.load %arg5[%c0_10, %c0_11] : memref<32x96xbf16, #tpu.memory_space<vmem>>, vector<32x96xbf16>
    %cst_12 = arith.constant dense<0.000000e+00> : vector<8x96xf32>
    %29 = tpu.matmul %27, %28, %cst_12 {dimension_numbers = #tpu.dot_dimension_numbers<[1], [0], [0], [1], [0, 0, 1, 1], [], []>} : vector<8x32xbf16>, vector<32x96xbf16>, vector<8x96xf32> -> vector<8x96xf32>
    %c0_13 = arith.constant 0 : index
    %c0_14 = arith.constant 0 : index
    %30 = vector.load %arg6[%c0_13, %c0_14] : memref<1x96xf32, #tpu.memory_space<vmem>>, vector<1x96xf32>
    %31 = vector.broadcast %30 : vector<1x96xf32> to vector<8x96xf32>
    %32 = arith.addf %29, %31 : vector<8x96xf32>
    %33 = vector.extract_strided_slice %32 {offsets = [0, 0], sizes = [8, 32], strides = [1, 1]} : vector<8x96xf32> to vector<8x32xf32>
    %34 = arith.truncf %33 : vector<8x32xf32> to vector<8x32xbf16>
    %c0_15 = arith.constant 0 : index
    %c0_16 = arith.constant 0 : index
    %c0_17 = arith.constant 0 : index
    %35 = vector.load %arg7[%c0_15, %c0_16, %c0_17] : memref<1x8x32xbf16, #tpu.memory_space<vmem>>, vector<1x8x32xbf16>
    %36 = vector.shape_cast %35 : vector<1x8x32xbf16> to vector<8x32xbf16>
    %37 = vector.shape_cast %34 : vector<8x32xbf16> to vector<1x8x32xbf16>
    tpu.vector_store %arg7[%c0_15, %c0_16, %c0_17], %37 {strides = array<i32>} : memref<1x8x32xbf16, #tpu.memory_space<vmem>>, vector<1x8x32xbf16>,
    %38 = vector.extract_strided_slice %32 {offsets = [0, 32], sizes = [8, 32], strides = [1, 1]} : vector<8x96xf32> to vector<8x32xf32>
    %39 = arith.truncf %38 : vector<8x32xf32> to vector<8x32xbf16>
    %c0_18 = arith.constant 0 : index
    %c0_19 = arith.constant 0 : index
    %c0_20 = arith.constant 0 : index
    %40 = vector.load %arg8[%c0_18, %c0_19, %c0_20] : memref<1x8x32xbf16, #tpu.memory_space<vmem>>, vector<1x8x32xbf16>
    %41 = vector.shape_cast %40 : vector<1x8x32xbf16> to vector<8x32xbf16>
    %42 = vector.shape_cast %39 : vector<8x32xbf16> to vector<1x8x32xbf16>
    tpu.vector_store %arg8[%c0_18, %c0_19, %c0_20], %42 {strides = array<i32>} : memref<1x8x32xbf16, #tpu.memory_space<vmem>>, vector<1x8x32xbf16>,
    %43 = vector.extract_strided_slice %32 {offsets = [0, 64], sizes = [8, 32], strides = [1, 1]} : vector<8x96xf32> to vector<8x32xf32>
    %44 = arith.truncf %43 : vector<8x32xf32> to vector<8x32xbf16>
    %c0_21 = arith.constant 0 : index
    %c0_22 = arith.constant 0 : index
    %c0_23 = arith.constant 0 : index
    %45 = vector.load %arg9[%c0_21, %c0_22, %c0_23] : memref<1x8x32xbf16, #tpu.memory_space<vmem>>, vector<1x8x32xbf16>
    %46 = vector.shape_cast %45 : vector<1x8x32xbf16> to vector<8x32xbf16>
    %47 = vector.shape_cast %44 : vector<8x32xbf16> to vector<1x8x32xbf16>
    tpu.vector_store %arg9[%c0_21, %c0_22, %c0_23], %47 {strides = array<i32>} : memref<1x8x32xbf16, #tpu.memory_space<vmem>>, vector<1x8x32xbf16>,
    return
  }
  func.func @transform_0(%arg0: i32, %arg1: i32) -> (i32, i32, i32) {
    %c0_i32 = arith.constant 0 : i32
    %c0_i32_0 = arith.constant 0 : i32
    return %arg0, %arg1, %c0_i32 : i32, i32, i32
  }
  func.func @transform_1(%arg0: i32, %arg1: i32) -> (i32, i32) {
    %c0_i32 = arith.constant 0 : i32
    %c0_i32_0 = arith.constant 0 : i32
    %c0_i32_1 = arith.constant 0 : i32
    return %c0_i32, %c0_i32_0 : i32, i32
  }
  func.func @transform_2(%arg0: i32, %arg1: i32) -> (i32, i32) {
    %c0_i32 = arith.constant 0 : i32
    %c0_i32_0 = arith.constant 0 : i32
    %c0_i32_1 = arith.constant 0 : i32
    return %c0_i32, %c0_i32_0 : i32, i32
  }
  func.func @transform_3(%arg0: i32, %arg1: i32) -> (i32, i32) {
    %c0_i32 = arith.constant 0 : i32
    %c0_i32_0 = arith.constant 0 : i32
    %c0_i32_1 = arith.constant 0 : i32
    return %c0_i32, %c0_i32_0 : i32, i32
  }
  func.func @transform_4(%arg0: i32, %arg1: i32) -> (i32, i32) {
    %c0_i32 = arith.constant 0 : i32
    %c0_i32_0 = arith.constant 0 : i32
    %c0_i32_1 = arith.constant 0 : i32
    return %c0_i32, %c0_i32_0 : i32, i32
  }
  func.func @transform_5(%arg0: i32, %arg1: i32) -> (i32, i32, i32) {
    %c0_i32 = arith.constant 0 : i32
    %c0_i32_0 = arith.constant 0 : i32
    return %arg0, %arg1, %c0_i32 : i32, i32, i32
  }
  func.func @transform_6(%arg0: i32, %arg1: i32) -> (i32, i32, i32) {
    %c0_i32 = arith.constant 0 : i32
    %c0_i32_0 = arith.constant 0 : i32
    return %arg0, %arg1, %c0_i32 : i32, i32, i32
  }
  func.func @transform_7(%arg0: i32, %arg1: i32) -> (i32, i32, i32) {
    %c0_i32 = arith.constant 0 : i32
    %c0_i32_0 = arith.constant 0 : i32
    return %arg0, %arg1, %c0_i32 : i32, i32, i32
  }
}

module attributes {stable_mosaic.version = 11 : i64} {
  func.func @_proj_mlp_kernel(%arg0: i32, %arg1: i32, %arg2: memref<1x8x32xbf16, #tpu.memory_space<vmem>>, %arg3: memref<1x8x32xbf16, #tpu.memory_space<vmem>>, %arg4: memref<32x32xbf16, #tpu.memory_space<vmem>>, %arg5: memref<1x32xf32, #tpu.memory_space<vmem>>, %arg6: memref<1x32xf32, #tpu.memory_space<vmem>>, %arg7: memref<1x32xf32, #tpu.memory_space<vmem>>, %arg8: memref<32x128xbf16, #tpu.memory_space<vmem>>, %arg9: memref<1x128xf32, #tpu.memory_space<vmem>>, %arg10: memref<128x32xbf16, #tpu.memory_space<vmem>>, %arg11: memref<1x32xf32, #tpu.memory_space<vmem>>, %arg12: memref<1x8x32xbf16, #tpu.memory_space<vmem>>) attributes {dimension_semantics = [#tpu.dimension_semantics<parallel>, #tpu.dimension_semantics<parallel>], iteration_bounds = array<i64: 2, 1>, scalar_prefetch = 0 : i64, scratch_operands = 0 : i64, tpu.core_type = #tpu.core_type<tc>, window_params = [{transform_indices = @transform_0, window_bounds = array<i64: 1, 8, 32>}, {transform_indices = @transform_1, window_bounds = array<i64: 1, 8, 32>}, {pipeline_mode = #tpu.pipeline_mode<synchronous>, transform_indices = @transform_2, window_bounds = array<i64: 32, 32>}, {pipeline_mode = #tpu.pipeline_mode<synchronous>, transform_indices = @transform_3, window_bounds = array<i64: 1, 32>}, {pipeline_mode = #tpu.pipeline_mode<synchronous>, transform_indices = @transform_4, window_bounds = array<i64: 1, 32>}, {pipeline_mode = #tpu.pipeline_mode<synchronous>, transform_indices = @transform_5, window_bounds = array<i64: 1, 32>}, {pipeline_mode = #tpu.pipeline_mode<synchronous>, transform_indices = @transform_6, window_bounds = array<i64: 32, 128>}, {pipeline_mode = #tpu.pipeline_mode<synchronous>, transform_indices = @transform_7, window_bounds = array<i64: 1, 128>}, {pipeline_mode = #tpu.pipeline_mode<synchronous>, transform_indices = @transform_8, window_bounds = array<i64: 128, 32>}, {pipeline_mode = #tpu.pipeline_mode<synchronous>, transform_indices = @transform_9, window_bounds = array<i64: 1, 32>}, {transform_indices = @transform_10, window_bounds = array<i64: 1, 8, 32>}]} {
    %c0 = arith.constant 0 : index
    %c0_0 = arith.constant 0 : index
    %c0_1 = arith.constant 0 : index
    %0 = vector.load %arg3[%c0, %c0_0, %c0_1] : memref<1x8x32xbf16, #tpu.memory_space<vmem>>, vector<1x8x32xbf16>
    %1 = vector.shape_cast %0 : vector<1x8x32xbf16> to vector<8x32xbf16>
    %c0_2 = arith.constant 0 : index
    %c0_3 = arith.constant 0 : index
    %2 = vector.load %arg4[%c0_2, %c0_3] : memref<32x32xbf16, #tpu.memory_space<vmem>>, vector<32x32xbf16>
    %cst = arith.constant dense<0.000000e+00> : vector<8x32xf32>
    %3 = tpu.matmul %1, %2, %cst {dimension_numbers = #tpu.dot_dimension_numbers<[1], [0], [0], [1], [0, 0, 1, 1], [], []>} : vector<8x32xbf16>, vector<32x32xbf16>, vector<8x32xf32> -> vector<8x32xf32>
    %c0_4 = arith.constant 0 : index
    %c0_5 = arith.constant 0 : index
    %4 = vector.load %arg5[%c0_4, %c0_5] : memref<1x32xf32, #tpu.memory_space<vmem>>, vector<1x32xf32>
    %5 = vector.broadcast %4 : vector<1x32xf32> to vector<8x32xf32>
    %6 = arith.addf %3, %5 : vector<8x32xf32>
    %c0_6 = arith.constant 0 : index
    %c0_7 = arith.constant 0 : index
    %c0_8 = arith.constant 0 : index
    %7 = vector.load %arg2[%c0_6, %c0_7, %c0_8] : memref<1x8x32xbf16, #tpu.memory_space<vmem>>, vector<1x8x32xbf16>
    %8 = vector.shape_cast %7 : vector<1x8x32xbf16> to vector<8x32xbf16>
    %9 = arith.extf %8 : vector<8x32xbf16> to vector<8x32xf32>
    %10 = arith.addf %9, %6 : vector<8x32xf32>
    %c0_9 = arith.constant 0 : index
    %c0_10 = arith.constant 0 : index
    %11 = vector.load %arg6[%c0_9, %c0_10] : memref<1x32xf32, #tpu.memory_space<vmem>>, vector<1x32xf32>
    %c0_11 = arith.constant 0 : index
    %c0_12 = arith.constant 0 : index
    %12 = vector.load %arg7[%c0_11, %c0_12] : memref<1x32xf32, #tpu.memory_space<vmem>>, vector<1x32xf32>
    %cst_13 = arith.constant dense<0.000000e+00> : vector<8xf32>
    %13 = vector.multi_reduction <add>, %10, %cst_13 [1] : vector<8x32xf32> to vector<8xf32>
    %14 = vector.shape_cast %13 : vector<8xf32> to vector<8x1xf32>
    %cst_14 = arith.constant 3.200000e+01 : f32
    %15 = vector.broadcast %cst_14 : f32 to vector<8x1xf32>
    %16 = arith.divf %14, %15 : vector<8x1xf32>
    %17 = vector.broadcast %16 : vector<8x1xf32> to vector<8x32xf32>
    %18 = arith.subf %10, %17 : vector<8x32xf32>
    %19 = arith.mulf %18, %18 : vector<8x32xf32>
    %cst_15 = arith.constant dense<0.000000e+00> : vector<8xf32>
    %20 = vector.multi_reduction <add>, %19, %cst_15 [1] : vector<8x32xf32> to vector<8xf32>
    %21 = vector.shape_cast %20 : vector<8xf32> to vector<8x1xf32>
    %cst_16 = arith.constant 3.200000e+01 : f32
    %22 = vector.broadcast %cst_16 : f32 to vector<8x1xf32>
    %23 = arith.divf %21, %22 : vector<8x1xf32>
    %24 = vector.broadcast %16 : vector<8x1xf32> to vector<8x32xf32>
    %25 = arith.subf %10, %24 : vector<8x32xf32>
    %cst_17 = arith.constant 9.99999974E-6 : f32
    %26 = vector.broadcast %cst_17 : f32 to vector<8x1xf32>
    %27 = arith.addf %23, %26 : vector<8x1xf32>
    %28 = math.rsqrt %27 : vector<8x1xf32>
    %29 = vector.broadcast %28 : vector<8x1xf32> to vector<8x32xf32>
    %30 = arith.mulf %25, %29 : vector<8x32xf32>
    %31 = vector.broadcast %11 : vector<1x32xf32> to vector<8x32xf32>
    %32 = arith.mulf %30, %31 : vector<8x32xf32>
    %33 = vector.broadcast %12 : vector<1x32xf32> to vector<8x32xf32>
    %34 = arith.addf %32, %33 : vector<8x32xf32>
    %35 = arith.truncf %34 : vector<8x32xf32> to vector<8x32xbf16>
    %c0_18 = arith.constant 0 : index
    %c0_19 = arith.constant 0 : index
    %36 = vector.load %arg8[%c0_18, %c0_19] : memref<32x128xbf16, #tpu.memory_space<vmem>>, vector<32x128xbf16>
    %cst_20 = arith.constant dense<0.000000e+00> : vector<8x128xf32>
    %37 = tpu.matmul %35, %36, %cst_20 {dimension_numbers = #tpu.dot_dimension_numbers<[1], [0], [0], [1], [0, 0, 1, 1], [], []>} : vector<8x32xbf16>, vector<32x128xbf16>, vector<8x128xf32> -> vector<8x128xf32>
    %c0_21 = arith.constant 0 : index
    %c0_22 = arith.constant 0 : index
    %38 = vector.load %arg9[%c0_21, %c0_22] : memref<1x128xf32, #tpu.memory_space<vmem>>, vector<1x128xf32>
    %39 = vector.broadcast %38 : vector<1x128xf32> to vector<8x128xf32>
    %40 = arith.addf %37, %39 : vector<8x128xf32>
    %41 = arith.mulf %40, %40 : vector<8x128xf32>
    %42 = arith.mulf %40, %41 : vector<8x128xf32>
    %cst_23 = arith.constant 4.471500e-02 : f32
    %43 = vector.broadcast %cst_23 : f32 to vector<8x128xf32>
    %44 = arith.mulf %43, %42 : vector<8x128xf32>
    %45 = arith.addf %40, %44 : vector<8x128xf32>
    %cst_24 = arith.constant 0.797884583 : f32
    %46 = vector.broadcast %cst_24 : f32 to vector<8x128xf32>
    %47 = arith.mulf %46, %45 : vector<8x128xf32>
    %48 = math.tanh %47 : vector<8x128xf32>
    %cst_25 = arith.constant 1.000000e+00 : f32
    %49 = vector.broadcast %cst_25 : f32 to vector<8x128xf32>
    %50 = arith.addf %49, %48 : vector<8x128xf32>
    %cst_26 = arith.constant 5.000000e-01 : f32
    %51 = vector.broadcast %cst_26 : f32 to vector<8x128xf32>
    %52 = arith.mulf %51, %50 : vector<8x128xf32>
    %53 = arith.mulf %40, %52 : vector<8x128xf32>
    %54 = arith.truncf %53 : vector<8x128xf32> to vector<8x128xbf16>
    %c0_27 = arith.constant 0 : index
    %c0_28 = arith.constant 0 : index
    %55 = vector.load %arg10[%c0_27, %c0_28] : memref<128x32xbf16, #tpu.memory_space<vmem>>, vector<128x32xbf16>
    %cst_29 = arith.constant dense<0.000000e+00> : vector<8x32xf32>
    %56 = tpu.matmul %54, %55, %cst_29 {dimension_numbers = #tpu.dot_dimension_numbers<[1], [0], [0], [1], [0, 0, 1, 1], [], []>} : vector<8x128xbf16>, vector<128x32xbf16>, vector<8x32xf32> -> vector<8x32xf32>
    %c0_30 = arith.constant 0 : index
    %c0_31 = arith.constant 0 : index
    %57 = vector.load %arg11[%c0_30, %c0_31] : memref<1x32xf32, #tpu.memory_space<vmem>>, vector<1x32xf32>
    %58 = vector.broadcast %57 : vector<1x32xf32> to vector<8x32xf32>
    %59 = arith.addf %56, %58 : vector<8x32xf32>
    %60 = arith.addf %10, %59 : vector<8x32xf32>
    %61 = arith.truncf %60 : vector<8x32xf32> to vector<8x32xbf16>
    %c0_32 = arith.constant 0 : index
    %c0_33 = arith.constant 0 : index
    %c0_34 = arith.constant 0 : index
    %62 = vector.load %arg12[%c0_32, %c0_33, %c0_34] : memref<1x8x32xbf16, #tpu.memory_space<vmem>>, vector<1x8x32xbf16>
    %63 = vector.shape_cast %62 : vector<1x8x32xbf16> to vector<8x32xbf16>
    %64 = vector.shape_cast %61 : vector<8x32xbf16> to vector<1x8x32xbf16>
    tpu.vector_store %arg12[%c0_32, %c0_33, %c0_34], %64 {strides = array<i32>} : memref<1x8x32xbf16, #tpu.memory_space<vmem>>, vector<1x8x32xbf16>,
    return
  }
  func.func @transform_0(%arg0: i32, %arg1: i32) -> (i32, i32, i32) {
    %c0_i32 = arith.constant 0 : i32
    %c0_i32_0 = arith.constant 0 : i32
    return %arg0, %arg1, %c0_i32 : i32, i32, i32
  }
  func.func @transform_1(%arg0: i32, %arg1: i32) -> (i32, i32, i32) {
    %c0_i32 = arith.constant 0 : i32
    %c0_i32_0 = arith.constant 0 : i32
    return %arg0, %arg1, %c0_i32 : i32, i32, i32
  }
  func.func @transform_2(%arg0: i32, %arg1: i32) -> (i32, i32) {
    %c0_i32 = arith.constant 0 : i32
    %c0_i32_0 = arith.constant 0 : i32
    %c0_i32_1 = arith.constant 0 : i32
    return %c0_i32, %c0_i32_0 : i32, i32
  }
  func.func @transform_3(%arg0: i32, %arg1: i32) -> (i32, i32) {
    %c0_i32 = arith.constant 0 : i32
    %c0_i32_0 = arith.constant 0 : i32
    %c0_i32_1 = arith.constant 0 : i32
    return %c0_i32, %c0_i32_0 : i32, i32
  }
  func.func @transform_4(%arg0: i32, %arg1: i32) -> (i32, i32) {
    %c0_i32 = arith.constant 0 : i32
    %c0_i32_0 = arith.constant 0 : i32
    %c0_i32_1 = arith.constant 0 : i32
    return %c0_i32, %c0_i32_0 : i32, i32
  }
  func.func @transform_5(%arg0: i32, %arg1: i32) -> (i32, i32) {
    %c0_i32 = arith.constant 0 : i32
    %c0_i32_0 = arith.constant 0 : i32
    %c0_i32_1 = arith.constant 0 : i32
    return %c0_i32, %c0_i32_0 : i32, i32
  }
  func.func @transform_6(%arg0: i32, %arg1: i32) -> (i32, i32) {
    %c0_i32 = arith.constant 0 : i32
    %c0_i32_0 = arith.constant 0 : i32
    %c0_i32_1 = arith.constant 0 : i32
    return %c0_i32, %c0_i32_0 : i32, i32
  }
  func.func @transform_7(%arg0: i32, %arg1: i32) -> (i32, i32) {
    %c0_i32 = arith.constant 0 : i32
    %c0_i32_0 = arith.constant 0 : i32
    %c0_i32_1 = arith.constant 0 : i32
    return %c0_i32, %c0_i32_0 : i32, i32
  }
  func.func @transform_8(%arg0: i32, %arg1: i32) -> (i32, i32) {
    %c0_i32 = arith.constant 0 : i32
    %c0_i32_0 = arith.constant 0 : i32
    %c0_i32_1 = arith.constant 0 : i32
    return %c0_i32, %c0_i32_0 : i32, i32
  }
  func.func @transform_9(%arg0: i32, %arg1: i32) -> (i32, i32) {
    %c0_i32 = arith.constant 0 : i32
    %c0_i32_0 = arith.constant 0 : i32
    %c0_i32_1 = arith.constant 0 : i32
    return %c0_i32, %c0_i32_0 : i32, i32
  }
  func.func @transform_10(%arg0: i32, %arg1: i32) -> (i32, i32, i32) {
    %c0_i32 = arith.constant 0 : i32
    %c0_i32_0 = arith.constant 0 : i32
    return %arg0, %arg1, %c0_i32 : i32, i32, i32
  }
}

module attributes {stable_mosaic.version = 11 : i64} {
  func.func @_flash_kernel(%arg0: i32, %arg1: i32, %arg2: i32, %arg3: memref<1x8x32xbf16, #tpu.memory_space<vmem>>, %arg4: memref<1x8x32xbf16, #tpu.memory_space<vmem>>, %arg5: memref<1x8x32xbf16, #tpu.memory_space<vmem>>, %arg6: memref<1x8x32xbf16, #tpu.memory_space<vmem>>) attributes {dimension_semantics = [#tpu.dimension_semantics<parallel>, #tpu.dimension_semantics<parallel>, #tpu.dimension_semantics<parallel>], iteration_bounds = array<i64: 2, 1, 1>, scalar_prefetch = 0 : i64, scratch_operands = 0 : i64, tpu.core_type = #tpu.core_type<tc>, window_params = [{transform_indices = @transform_0, window_bounds = array<i64: 1, 8, 32>}, {transform_indices = @transform_1, window_bounds = array<i64: 1, 8, 32>}, {transform_indices = @transform_2, window_bounds = array<i64: 1, 8, 32>}, {transform_indices = @transform_3, window_bounds = array<i64: 1, 8, 32>}]} {
    %c0 = arith.constant 0 : index
    %c0_0 = arith.constant 0 : index
    %c0_1 = arith.constant 0 : index
    %0 = vector.load %arg3[%c0, %c0_0, %c0_1] : memref<1x8x32xbf16, #tpu.memory_space<vmem>>, vector<1x8x32xbf16>
    %1 = vector.shape_cast %0 : vector<1x8x32xbf16> to vector<8x32xbf16>
    %2 = vector.extract_strided_slice %1 {offsets = [0, 0], sizes = [8, 8], strides = [1, 1]} : vector<8x32xbf16> to vector<8x8xbf16>
    %3 = arith.extf %2 : vector<8x8xbf16> to vector<8x8xf32>
    %cst = arith.constant 0.353553385 : f32
    %4 = vector.broadcast %cst : f32 to vector<8x8xf32>
    %5 = arith.mulf %3, %4 : vector<8x8xf32>
    %6 = arith.truncf %5 : vector<8x8xf32> to vector<8x8xbf16>
    %7 = vector.extract_strided_slice %1 {offsets = [0, 8], sizes = [8, 8], strides = [1, 1]} : vector<8x32xbf16> to vector<8x8xbf16>
    %8 = arith.extf %7 : vector<8x8xbf16> to vector<8x8xf32>
    %cst_2 = arith.constant 0.353553385 : f32
    %9 = vector.broadcast %cst_2 : f32 to vector<8x8xf32>
    %10 = arith.mulf %8, %9 : vector<8x8xf32>
    %11 = arith.truncf %10 : vector<8x8xf32> to vector<8x8xbf16>
    %12 = vector.extract_strided_slice %1 {offsets = [0, 16], sizes = [8, 8], strides = [1, 1]} : vector<8x32xbf16> to vector<8x8xbf16>
    %13 = arith.extf %12 : vector<8x8xbf16> to vector<8x8xf32>
    %cst_3 = arith.constant 0.353553385 : f32
    %14 = vector.broadcast %cst_3 : f32 to vector<8x8xf32>
    %15 = arith.mulf %13, %14 : vector<8x8xf32>
    %16 = arith.truncf %15 : vector<8x8xf32> to vector<8x8xbf16>
    %17 = vector.extract_strided_slice %1 {offsets = [0, 24], sizes = [8, 8], strides = [1, 1]} : vector<8x32xbf16> to vector<8x8xbf16>
    %18 = arith.extf %17 : vector<8x8xbf16> to vector<8x8xf32>
    %cst_4 = arith.constant 0.353553385 : f32
    %19 = vector.broadcast %cst_4 : f32 to vector<8x8xf32>
    %20 = arith.mulf %18, %19 : vector<8x8xf32>
    %21 = arith.truncf %20 : vector<8x8xf32> to vector<8x8xbf16>
    %cst_5 = arith.constant -1.000000e+30 : f32
    %22 = vector.broadcast %cst_5 : f32 to vector<8x1xf32>
    %cst_6 = arith.constant 0.000000e+00 : f32
    %23 = vector.broadcast %cst_6 : f32 to vector<8x1xf32>
    %cst_7 = arith.constant 0.000000e+00 : f32
    %24 = vector.broadcast %cst_7 : f32 to vector<8x8xf32>
    %c0_i32 = arith.constant 0 : i32
    %25 = arith.subi %arg2, %c0_i32 : i32
    %26 = arith.addi %c0_i32, %25 : i32
    %c1_i32 = arith.constant 1 : i32
    %27:12 = scf.for %arg7 = %c0_i32 to %26 step %c1_i32 iter_args(%arg8 = %22, %arg9 = %23, %arg10 = %24, %arg11 = %22, %arg12 = %23, %arg13 = %24, %arg14 = %22, %arg15 = %23, %arg16 = %24, %arg17 = %22, %arg18 = %23, %arg19 = %24) -> (vector<8x1xf32>, vector<8x1xf32>, vector<8x8xf32>, vector<8x1xf32>, vector<8x1xf32>, vector<8x8xf32>, vector<8x1xf32>, vector<8x1xf32>, vector<8x8xf32>, vector<8x1xf32>, vector<8x1xf32>, vector<8x8xf32>)  : i32 {
      %c8_i32_35 = arith.constant 8 : i32
      %147 = arith.muli %arg7, %c8_i32_35 : i32
      %148 = tpu.assume_multiple %147, 8 : i32
      %c0_36 = arith.constant 0 : index
      %149 = arith.index_cast %148 : i32 to index
      %c0_37 = arith.constant 0 : index
      %150 = vector.load %arg4[%c0_36, %149, %c0_37] : memref<1x8x32xbf16, #tpu.memory_space<vmem>>, vector<1x8x32xbf16>
      %151 = vector.shape_cast %150 : vector<1x8x32xbf16> to vector<8x32xbf16>
      %c0_38 = arith.constant 0 : index
      %152 = arith.index_cast %148 : i32 to index
      %c0_39 = arith.constant 0 : index
      %153 = vector.load %arg5[%c0_38, %152, %c0_39] : memref<1x8x32xbf16, #tpu.memory_space<vmem>>, vector<1x8x32xbf16>
      %154 = vector.shape_cast %153 : vector<1x8x32xbf16> to vector<8x32xbf16>
      %155 = vector.extract_strided_slice %151 {offsets = [0, 0], sizes = [8, 8], strides = [1, 1]} : vector<8x32xbf16> to vector<8x8xbf16>
      %156 = vector.extract_strided_slice %154 {offsets = [0, 0], sizes = [8, 8], strides = [1, 1]} : vector<8x32xbf16> to vector<8x8xbf16>
      %cst_40 = arith.constant dense<0.000000e+00> : vector<8x8xf32>
      %157 = tpu.matmul %6, %155, %cst_40 {dimension_numbers = #tpu.dot_dimension_numbers<[1], [1], [0], [0], [0, 0, 1, 0], [], []>} : vector<8x8xbf16>, vector<8x8xbf16>, vector<8x8xf32> -> vector<8x8xf32>
      %cst_41 = arith.constant dense<0xFF800000> : vector<8xf32>
      %158 = vector.multi_reduction <maximumf>, %157, %cst_41 [1] : vector<8x8xf32> to vector<8xf32>
      %159 = vector.shape_cast %158 : vector<8xf32> to vector<8x1xf32>
      %160 = arith.maximumf %arg8, %159 : vector<8x1xf32>
      %161 = vector.broadcast %160 : vector<8x1xf32> to vector<8x8xf32>
      %162 = arith.subf %157, %161 : vector<8x8xf32>
      %163 = math.exp %162 : vector<8x8xf32>
      %164 = arith.subf %arg8, %160 : vector<8x1xf32>
      %165 = math.exp %164 : vector<8x1xf32>
      %166 = arith.mulf %165, %arg9 : vector<8x1xf32>
      %cst_42 = arith.constant dense<0.000000e+00> : vector<8xf32>
      %167 = vector.multi_reduction <add>, %163, %cst_42 [1] : vector<8x8xf32> to vector<8xf32>
      %168 = vector.shape_cast %167 : vector<8xf32> to vector<8x1xf32>
      %169 = arith.addf %166, %168 : vector<8x1xf32>
      %170 = vector.broadcast %165 : vector<8x1xf32> to vector<8x8xf32>
      %171 = arith.mulf %170, %arg10 : vector<8x8xf32>
      %172 = arith.truncf %163 : vector<8x8xf32> to vector<8x8xbf16>
      %cst_43 = arith.constant dense<0.000000e+00> : vector<8x8xf32>
      %173 = tpu.matmul %172, %156, %cst_43 {dimension_numbers = #tpu.dot_dimension_numbers<[1], [0], [0], [1], [0, 0, 1, 1], [], []>} : vector<8x8xbf16>, vector<8x8xbf16>, vector<8x8xf32> -> vector<8x8xf32>
      %174 = arith.addf %171, %173 : vector<8x8xf32>
      %175 = vector.extract_strided_slice %151 {offsets = [0, 8], sizes = [8, 8], strides = [1, 1]} : vector<8x32xbf16> to vector<8x8xbf16>
      %176 = vector.extract_strided_slice %154 {offsets = [0, 8], sizes = [8, 8], strides = [1, 1]} : vector<8x32xbf16> to vector<8x8xbf16>
      %cst_44 = arith.constant dense<0.000000e+00> : vector<8x8xf32>
      %177 = tpu.matmul %11, %175, %cst_44 {dimension_numbers = #tpu.dot_dimension_numbers<[1], [1], [0], [0], [0, 0, 1, 0], [], []>} : vector<8x8xbf16>, vector<8x8xbf16>, vector<8x8xf32> -> vector<8x8xf32>
      %cst_45 = arith.constant dense<0xFF800000> : vector<8xf32>
      %178 = vector.multi_reduction <maximumf>, %177, %cst_45 [1] : vector<8x8xf32> to vector<8xf32>
      %179 = vector.shape_cast %178 : vector<8xf32> to vector<8x1xf32>
      %180 = arith.maximumf %arg11, %179 : vector<8x1xf32>
      %181 = vector.broadcast %180 : vector<8x1xf32> to vector<8x8xf32>
      %182 = arith.subf %177, %181 : vector<8x8xf32>
      %183 = math.exp %182 : vector<8x8xf32>
      %184 = arith.subf %arg11, %180 : vector<8x1xf32>
      %185 = math.exp %184 : vector<8x1xf32>
      %186 = arith.mulf %185, %arg12 : vector<8x1xf32>
      %cst_46 = arith.constant dense<0.000000e+00> : vector<8xf32>
      %187 = vector.multi_reduction <add>, %183, %cst_46 [1] : vector<8x8xf32> to vector<8xf32>
      %188 = vector.shape_cast %187 : vector<8xf32> to vector<8x1xf32>
      %189 = arith.addf %186, %188 : vector<8x1xf32>
      %190 = vector.broadcast %185 : vector<8x1xf32> to vector<8x8xf32>
      %191 = arith.mulf %190, %arg13 : vector<8x8xf32>
      %192 = arith.truncf %183 : vector<8x8xf32> to vector<8x8xbf16>
      %cst_47 = arith.constant dense<0.000000e+00> : vector<8x8xf32>
      %193 = tpu.matmul %192, %176, %cst_47 {dimension_numbers = #tpu.dot_dimension_numbers<[1], [0], [0], [1], [0, 0, 1, 1], [], []>} : vector<8x8xbf16>, vector<8x8xbf16>, vector<8x8xf32> -> vector<8x8xf32>
      %194 = arith.addf %191, %193 : vector<8x8xf32>
      %195 = vector.extract_strided_slice %151 {offsets = [0, 16], sizes = [8, 8], strides = [1, 1]} : vector<8x32xbf16> to vector<8x8xbf16>
      %196 = vector.extract_strided_slice %154 {offsets = [0, 16], sizes = [8, 8], strides = [1, 1]} : vector<8x32xbf16> to vector<8x8xbf16>
      %cst_48 = arith.constant dense<0.000000e+00> : vector<8x8xf32>
      %197 = tpu.matmul %16, %195, %cst_48 {dimension_numbers = #tpu.dot_dimension_numbers<[1], [1], [0], [0], [0, 0, 1, 0], [], []>} : vector<8x8xbf16>, vector<8x8xbf16>, vector<8x8xf32> -> vector<8x8xf32>
      %cst_49 = arith.constant dense<0xFF800000> : vector<8xf32>
      %198 = vector.multi_reduction <maximumf>, %197, %cst_49 [1] : vector<8x8xf32> to vector<8xf32>
      %199 = vector.shape_cast %198 : vector<8xf32> to vector<8x1xf32>
      %200 = arith.maximumf %arg14, %199 : vector<8x1xf32>
      %201 = vector.broadcast %200 : vector<8x1xf32> to vector<8x8xf32>
      %202 = arith.subf %197, %201 : vector<8x8xf32>
      %203 = math.exp %202 : vector<8x8xf32>
      %204 = arith.subf %arg14, %200 : vector<8x1xf32>
      %205 = math.exp %204 : vector<8x1xf32>
      %206 = arith.mulf %205, %arg15 : vector<8x1xf32>
      %cst_50 = arith.constant dense<0.000000e+00> : vector<8xf32>
      %207 = vector.multi_reduction <add>, %203, %cst_50 [1] : vector<8x8xf32> to vector<8xf32>
      %208 = vector.shape_cast %207 : vector<8xf32> to vector<8x1xf32>
      %209 = arith.addf %206, %208 : vector<8x1xf32>
      %210 = vector.broadcast %205 : vector<8x1xf32> to vector<8x8xf32>
      %211 = arith.mulf %210, %arg16 : vector<8x8xf32>
      %212 = arith.truncf %203 : vector<8x8xf32> to vector<8x8xbf16>
      %cst_51 = arith.constant dense<0.000000e+00> : vector<8x8xf32>
      %213 = tpu.matmul %212, %196, %cst_51 {dimension_numbers = #tpu.dot_dimension_numbers<[1], [0], [0], [1], [0, 0, 1, 1], [], []>} : vector<8x8xbf16>, vector<8x8xbf16>, vector<8x8xf32> -> vector<8x8xf32>
      %214 = arith.addf %211, %213 : vector<8x8xf32>
      %215 = vector.extract_strided_slice %151 {offsets = [0, 24], sizes = [8, 8], strides = [1, 1]} : vector<8x32xbf16> to vector<8x8xbf16>
      %216 = vector.extract_strided_slice %154 {offsets = [0, 24], sizes = [8, 8], strides = [1, 1]} : vector<8x32xbf16> to vector<8x8xbf16>
      %cst_52 = arith.constant dense<0.000000e+00> : vector<8x8xf32>
      %217 = tpu.matmul %21, %215, %cst_52 {dimension_numbers = #tpu.dot_dimension_numbers<[1], [1], [0], [0], [0, 0, 1, 0], [], []>} : vector<8x8xbf16>, vector<8x8xbf16>, vector<8x8xf32> -> vector<8x8xf32>
      %cst_53 = arith.constant dense<0xFF800000> : vector<8xf32>
      %218 = vector.multi_reduction <maximumf>, %217, %cst_53 [1] : vector<8x8xf32> to vector<8xf32>
      %219 = vector.shape_cast %218 : vector<8xf32> to vector<8x1xf32>
      %220 = arith.maximumf %arg17, %219 : vector<8x1xf32>
      %221 = vector.broadcast %220 : vector<8x1xf32> to vector<8x8xf32>
      %222 = arith.subf %217, %221 : vector<8x8xf32>
      %223 = math.exp %222 : vector<8x8xf32>
      %224 = arith.subf %arg17, %220 : vector<8x1xf32>
      %225 = math.exp %224 : vector<8x1xf32>
      %226 = arith.mulf %225, %arg18 : vector<8x1xf32>
      %cst_54 = arith.constant dense<0.000000e+00> : vector<8xf32>
      %227 = vector.multi_reduction <add>, %223, %cst_54 [1] : vector<8x8xf32> to vector<8xf32>
      %228 = vector.shape_cast %227 : vector<8xf32> to vector<8x1xf32>
      %229 = arith.addf %226, %228 : vector<8x1xf32>
      %230 = vector.broadcast %225 : vector<8x1xf32> to vector<8x8xf32>
      %231 = arith.mulf %230, %arg19 : vector<8x8xf32>
      %232 = arith.truncf %223 : vector<8x8xf32> to vector<8x8xbf16>
      %cst_55 = arith.constant dense<0.000000e+00> : vector<8x8xf32>
      %233 = tpu.matmul %232, %216, %cst_55 {dimension_numbers = #tpu.dot_dimension_numbers<[1], [0], [0], [1], [0, 0, 1, 1], [], []>} : vector<8x8xbf16>, vector<8x8xbf16>, vector<8x8xf32> -> vector<8x8xf32>
      %234 = arith.addf %231, %233 : vector<8x8xf32>
      scf.yield %160, %169, %174, %180, %189, %194, %200, %209, %214, %220, %229, %234 : vector<8x1xf32>, vector<8x1xf32>, vector<8x8xf32>, vector<8x1xf32>, vector<8x1xf32>, vector<8x8xf32>, vector<8x1xf32>, vector<8x1xf32>, vector<8x8xf32>, vector<8x1xf32>, vector<8x1xf32>, vector<8x8xf32>
    }
    %28 = tpu.iota {dimensions = array<i32: 0>} : vector<8x8xi32>
    %29 = tpu.iota {dimensions = array<i32: 1>} : vector<8x8xi32>
    %30 = arith.cmpi sge, %28, %29 : vector<8x8xi32>
    %c8_i32 = arith.constant 8 : i32
    %31 = arith.muli %arg2, %c8_i32 : i32
    %32 = tpu.assume_multiple %31, 8 : i32
    %c0_8 = arith.constant 0 : index
    %33 = arith.index_cast %32 : i32 to index
    %c0_9 = arith.constant 0 : index
    %34 = vector.load %arg4[%c0_8, %33, %c0_9] : memref<1x8x32xbf16, #tpu.memory_space<vmem>>, vector<1x8x32xbf16>
    %35 = vector.shape_cast %34 : vector<1x8x32xbf16> to vector<8x32xbf16>
    %c0_10 = arith.constant 0 : index
    %36 = arith.index_cast %32 : i32 to index
    %c0_11 = arith.constant 0 : index
    %37 = vector.load %arg5[%c0_10, %36, %c0_11] : memref<1x8x32xbf16, #tpu.memory_space<vmem>>, vector<1x8x32xbf16>
    %38 = vector.shape_cast %37 : vector<1x8x32xbf16> to vector<8x32xbf16>
    %39 = vector.extract_strided_slice %35 {offsets = [0, 0], sizes = [8, 8], strides = [1, 1]} : vector<8x32xbf16> to vector<8x8xbf16>
    %40 = vector.extract_strided_slice %38 {offsets = [0, 0], sizes = [8, 8], strides = [1, 1]} : vector<8x32xbf16> to vector<8x8xbf16>
    %cst_12 = arith.constant dense<0.000000e+00> : vector<8x8xf32>
    %41 = tpu.matmul %6, %39, %cst_12 {dimension_numbers = #tpu.dot_dimension_numbers<[1], [1], [0], [0], [0, 0, 1, 0], [], []>} : vector<8x8xbf16>, vector<8x8xbf16>, vector<8x8xf32> -> vector<8x8xf32>
    %cst_13 = arith.constant -1.000000e+30 : f32
    %42 = vector.broadcast %cst_13 : f32 to vector<8x8xf32>
    %43 = arith.select %30, %41, %42 : vector<8x8xi1>, vector<8x8xf32>
    %cst_14 = arith.constant dense<0xFF800000> : vector<8xf32>
    %44 = vector.multi_reduction <maximumf>, %43, %cst_14 [1] : vector<8x8xf32> to vector<8xf32>
    %45 = vector.shape_cast %44 : vector<8xf32> to vector<8x1xf32>
    %46 = arith.maximumf %27#0, %45 : vector<8x1xf32>
    %47 = vector.broadcast %46 : vector<8x1xf32> to vector<8x8xf32>
    %48 = arith.subf %43, %47 : vector<8x8xf32>
    %49 = math.exp %48 : vector<8x8xf32>
    %50 = arith.subf %27#0, %46 : vector<8x1xf32>
    %51 = math.exp %50 : vector<8x1xf32>
    %52 = arith.mulf %51, %27#1 : vector<8x1xf32>
    %cst_15 = arith.constant dense<0.000000e+00> : vector<8xf32>
    %53 = vector.multi_reduction <add>, %49, %cst_15 [1] : vector<8x8xf32> to vector<8xf32>
    %54 = vector.shape_cast %53 : vector<8xf32> to vector<8x1xf32>
    %55 = arith.addf %52, %54 : vector<8x1xf32>
    %56 = vector.broadcast %51 : vector<8x1xf32> to vector<8x8xf32>
    %57 = arith.mulf %56, %27#2 : vector<8x8xf32>
    %58 = arith.truncf %49 : vector<8x8xf32> to vector<8x8xbf16>
    %cst_16 = arith.constant dense<0.000000e+00> : vector<8x8xf32>
    %59 = tpu.matmul %58, %40, %cst_16 {dimension_numbers = #tpu.dot_dimension_numbers<[1], [0], [0], [1], [0, 0, 1, 1], [], []>} : vector<8x8xbf16>, vector<8x8xbf16>, vector<8x8xf32> -> vector<8x8xf32>
    %60 = arith.addf %57, %59 : vector<8x8xf32>
    %61 = vector.extract_strided_slice %35 {offsets = [0, 8], sizes = [8, 8], strides = [1, 1]} : vector<8x32xbf16> to vector<8x8xbf16>
    %62 = vector.extract_strided_slice %38 {offsets = [0, 8], sizes = [8, 8], strides = [1, 1]} : vector<8x32xbf16> to vector<8x8xbf16>
    %cst_17 = arith.constant dense<0.000000e+00> : vector<8x8xf32>
    %63 = tpu.matmul %11, %61, %cst_17 {dimension_numbers = #tpu.dot_dimension_numbers<[1], [1], [0], [0], [0, 0, 1, 0], [], []>} : vector<8x8xbf16>, vector<8x8xbf16>, vector<8x8xf32> -> vector<8x8xf32>
    %cst_18 = arith.constant -1.000000e+30 : f32
    %64 = vector.broadcast %cst_18 : f32 to vector<8x8xf32>
    %65 = arith.select %30, %63, %64 : vector<8x8xi1>, vector<8x8xf32>
    %cst_19 = arith.constant dense<0xFF800000> : vector<8xf32>
    %66 = vector.multi_reduction <maximumf>, %65, %cst_19 [1] : vector<8x8xf32> to vector<8xf32>
    %67 = vector.shape_cast %66 : vector<8xf32> to vector<8x1xf32>
    %68 = arith.maximumf %27#3, %67 : vector<8x1xf32>
    %69 = vector.broadcast %68 : vector<8x1xf32> to vector<8x8xf32>
    %70 = arith.subf %65, %69 : vector<8x8xf32>
    %71 = math.exp %70 : vector<8x8xf32>
    %72 = arith.subf %27#3, %68 : vector<8x1xf32>
    %73 = math.exp %72 : vector<8x1xf32>
    %74 = arith.mulf %73, %27#4 : vector<8x1xf32>
    %cst_20 = arith.constant dense<0.000000e+00> : vector<8xf32>
    %75 = vector.multi_reduction <add>, %71, %cst_20 [1] : vector<8x8xf32> to vector<8xf32>
    %76 = vector.shape_cast %75 : vector<8xf32> to vector<8x1xf32>
    %77 = arith.addf %74, %76 : vector<8x1xf32>
    %78 = vector.broadcast %73 : vector<8x1xf32> to vector<8x8xf32>
    %79 = arith.mulf %78, %27#5 : vector<8x8xf32>
    %80 = arith.truncf %71 : vector<8x8xf32> to vector<8x8xbf16>
    %cst_21 = arith.constant dense<0.000000e+00> : vector<8x8xf32>
    %81 = tpu.matmul %80, %62, %cst_21 {dimension_numbers = #tpu.dot_dimension_numbers<[1], [0], [0], [1], [0, 0, 1, 1], [], []>} : vector<8x8xbf16>, vector<8x8xbf16>, vector<8x8xf32> -> vector<8x8xf32>
    %82 = arith.addf %79, %81 : vector<8x8xf32>
    %83 = vector.extract_strided_slice %35 {offsets = [0, 16], sizes = [8, 8], strides = [1, 1]} : vector<8x32xbf16> to vector<8x8xbf16>
    %84 = vector.extract_strided_slice %38 {offsets = [0, 16], sizes = [8, 8], strides = [1, 1]} : vector<8x32xbf16> to vector<8x8xbf16>
    %cst_22 = arith.constant dense<0.000000e+00> : vector<8x8xf32>
    %85 = tpu.matmul %16, %83, %cst_22 {dimension_numbers = #tpu.dot_dimension_numbers<[1], [1], [0], [0], [0, 0, 1, 0], [], []>} : vector<8x8xbf16>, vector<8x8xbf16>, vector<8x8xf32> -> vector<8x8xf32>
    %cst_23 = arith.constant -1.000000e+30 : f32
    %86 = vector.broadcast %cst_23 : f32 to vector<8x8xf32>
    %87 = arith.select %30, %85, %86 : vector<8x8xi1>, vector<8x8xf32>
    %cst_24 = arith.constant dense<0xFF800000> : vector<8xf32>
    %88 = vector.multi_reduction <maximumf>, %87, %cst_24 [1] : vector<8x8xf32> to vector<8xf32>
    %89 = vector.shape_cast %88 : vector<8xf32> to vector<8x1xf32>
    %90 = arith.maximumf %27#6, %89 : vector<8x1xf32>
    %91 = vector.broadcast %90 : vector<8x1xf32> to vector<8x8xf32>
    %92 = arith.subf %87, %91 : vector<8x8xf32>
    %93 = math.exp %92 : vector<8x8xf32>
    %94 = arith.subf %27#6, %90 : vector<8x1xf32>
    %95 = math.exp %94 : vector<8x1xf32>
    %96 = arith.mulf %95, %27#7 : vector<8x1xf32>
    %cst_25 = arith.constant dense<0.000000e+00> : vector<8xf32>
    %97 = vector.multi_reduction <add>, %93, %cst_25 [1] : vector<8x8xf32> to vector<8xf32>
    %98 = vector.shape_cast %97 : vector<8xf32> to vector<8x1xf32>
    %99 = arith.addf %96, %98 : vector<8x1xf32>
    %100 = vector.broadcast %95 : vector<8x1xf32> to vector<8x8xf32>
    %101 = arith.mulf %100, %27#8 : vector<8x8xf32>
    %102 = arith.truncf %93 : vector<8x8xf32> to vector<8x8xbf16>
    %cst_26 = arith.constant dense<0.000000e+00> : vector<8x8xf32>
    %103 = tpu.matmul %102, %84, %cst_26 {dimension_numbers = #tpu.dot_dimension_numbers<[1], [0], [0], [1], [0, 0, 1, 1], [], []>} : vector<8x8xbf16>, vector<8x8xbf16>, vector<8x8xf32> -> vector<8x8xf32>
    %104 = arith.addf %101, %103 : vector<8x8xf32>
    %105 = vector.extract_strided_slice %35 {offsets = [0, 24], sizes = [8, 8], strides = [1, 1]} : vector<8x32xbf16> to vector<8x8xbf16>
    %106 = vector.extract_strided_slice %38 {offsets = [0, 24], sizes = [8, 8], strides = [1, 1]} : vector<8x32xbf16> to vector<8x8xbf16>
    %cst_27 = arith.constant dense<0.000000e+00> : vector<8x8xf32>
    %107 = tpu.matmul %21, %105, %cst_27 {dimension_numbers = #tpu.dot_dimension_numbers<[1], [1], [0], [0], [0, 0, 1, 0], [], []>} : vector<8x8xbf16>, vector<8x8xbf16>, vector<8x8xf32> -> vector<8x8xf32>
    %cst_28 = arith.constant -1.000000e+30 : f32
    %108 = vector.broadcast %cst_28 : f32 to vector<8x8xf32>
    %109 = arith.select %30, %107, %108 : vector<8x8xi1>, vector<8x8xf32>
    %cst_29 = arith.constant dense<0xFF800000> : vector<8xf32>
    %110 = vector.multi_reduction <maximumf>, %109, %cst_29 [1] : vector<8x8xf32> to vector<8xf32>
    %111 = vector.shape_cast %110 : vector<8xf32> to vector<8x1xf32>
    %112 = arith.maximumf %27#9, %111 : vector<8x1xf32>
    %113 = vector.broadcast %112 : vector<8x1xf32> to vector<8x8xf32>
    %114 = arith.subf %109, %113 : vector<8x8xf32>
    %115 = math.exp %114 : vector<8x8xf32>
    %116 = arith.subf %27#9, %112 : vector<8x1xf32>
    %117 = math.exp %116 : vector<8x1xf32>
    %118 = arith.mulf %117, %27#10 : vector<8x1xf32>
    %cst_30 = arith.constant dense<0.000000e+00> : vector<8xf32>
    %119 = vector.multi_reduction <add>, %115, %cst_30 [1] : vector<8x8xf32> to vector<8xf32>
    %120 = vector.shape_cast %119 : vector<8xf32> to vector<8x1xf32>
    %121 = arith.addf %118, %120 : vector<8x1xf32>
    %122 = vector.broadcast %117 : vector<8x1xf32> to vector<8x8xf32>
    %123 = arith.mulf %122, %27#11 : vector<8x8xf32>
    %124 = arith.truncf %115 : vector<8x8xf32> to vector<8x8xbf16>
    %cst_31 = arith.constant dense<0.000000e+00> : vector<8x8xf32>
    %125 = tpu.matmul %124, %106, %cst_31 {dimension_numbers = #tpu.dot_dimension_numbers<[1], [0], [0], [1], [0, 0, 1, 1], [], []>} : vector<8x8xbf16>, vector<8x8xbf16>, vector<8x8xf32> -> vector<8x8xf32>
    %126 = arith.addf %123, %125 : vector<8x8xf32>
    %127 = tpu.reciprocal %55 {approx = true} : vector<8x1xf32> -> vector<8x1xf32>
    %128 = vector.broadcast %127 : vector<8x1xf32> to vector<8x8xf32>
    %129 = arith.mulf %60, %128 : vector<8x8xf32>
    %130 = arith.truncf %129 : vector<8x8xf32> to vector<8x8xbf16>
    %131 = tpu.reciprocal %77 {approx = true} : vector<8x1xf32> -> vector<8x1xf32>
    %132 = vector.broadcast %131 : vector<8x1xf32> to vector<8x8xf32>
    %133 = arith.mulf %82, %132 : vector<8x8xf32>
    %134 = arith.truncf %133 : vector<8x8xf32> to vector<8x8xbf16>
    %135 = tpu.reciprocal %99 {approx = true} : vector<8x1xf32> -> vector<8x1xf32>
    %136 = vector.broadcast %135 : vector<8x1xf32> to vector<8x8xf32>
    %137 = arith.mulf %104, %136 : vector<8x8xf32>
    %138 = arith.truncf %137 : vector<8x8xf32> to vector<8x8xbf16>
    %139 = tpu.reciprocal %121 {approx = true} : vector<8x1xf32> -> vector<8x1xf32>
    %140 = vector.broadcast %139 : vector<8x1xf32> to vector<8x8xf32>
    %141 = arith.mulf %126, %140 : vector<8x8xf32>
    %142 = arith.truncf %141 : vector<8x8xf32> to vector<8x8xbf16>
    %143 = tpu.concatenate %130, %134, %138, %142 in 1 : vector<8x8xbf16>, vector<8x8xbf16>, vector<8x8xbf16>, vector<8x8xbf16> -> vector<8x32xbf16>
    %c0_32 = arith.constant 0 : index
    %c0_33 = arith.constant 0 : index
    %c0_34 = arith.constant 0 : index
    %144 = vector.load %arg6[%c0_32, %c0_33, %c0_34] : memref<1x8x32xbf16, #tpu.memory_space<vmem>>, vector<1x8x32xbf16>
    %145 = vector.shape_cast %144 : vector<1x8x32xbf16> to vector<8x32xbf16>
    %146 = vector.shape_cast %143 : vector<8x32xbf16> to vector<1x8x32xbf16>
    tpu.vector_store %arg6[%c0_32, %c0_33, %c0_34], %146 {strides = array<i32>} : memref<1x8x32xbf16, #tpu.memory_space<vmem>>, vector<1x8x32xbf16>,
    return
  }
  func.func @transform_0(%arg0: i32, %arg1: i32, %arg2: i32) -> (i32, i32, i32) {
    %c0_i32 = arith.constant 0 : i32
    return %arg0, %arg2, %arg1 : i32, i32, i32
  }
  func.func @transform_1(%arg0: i32, %arg1: i32, %arg2: i32) -> (i32, i32, i32) {
    %c0_i32 = arith.constant 0 : i32
    %c0_i32_0 = arith.constant 0 : i32
    return %arg0, %c0_i32, %arg1 : i32, i32, i32
  }
  func.func @transform_2(%arg0: i32, %arg1: i32, %arg2: i32) -> (i32, i32, i32) {
    %c0_i32 = arith.constant 0 : i32
    %c0_i32_0 = arith.constant 0 : i32
    return %arg0, %c0_i32, %arg1 : i32, i32, i32
  }
  func.func @transform_3(%arg0: i32, %arg1: i32, %arg2: i32) -> (i32, i32, i32) {
    %c0_i32 = arith.constant 0 : i32
    return %arg0, %arg2, %arg1 : i32, i32, i32
  }
}

module attributes {stable_mosaic.version = 11 : i64} {
  func.func @_lnf_kernel(%arg0: i32, %arg1: i32, %arg2: memref<1x8x32xbf16, #tpu.memory_space<vmem>>, %arg3: memref<1x32xf32, #tpu.memory_space<vmem>>, %arg4: memref<1x32xf32, #tpu.memory_space<vmem>>, %arg5: memref<1x8x32xbf16, #tpu.memory_space<vmem>>) attributes {dimension_semantics = [#tpu.dimension_semantics<parallel>, #tpu.dimension_semantics<parallel>], iteration_bounds = array<i64: 2, 1>, scalar_prefetch = 0 : i64, scratch_operands = 0 : i64, tpu.core_type = #tpu.core_type<tc>, window_params = [{transform_indices = @transform_0, window_bounds = array<i64: 1, 8, 32>}, {pipeline_mode = #tpu.pipeline_mode<synchronous>, transform_indices = @transform_1, window_bounds = array<i64: 1, 32>}, {pipeline_mode = #tpu.pipeline_mode<synchronous>, transform_indices = @transform_2, window_bounds = array<i64: 1, 32>}, {transform_indices = @transform_3, window_bounds = array<i64: 1, 8, 32>}]} {
    %c0 = arith.constant 0 : index
    %c0_0 = arith.constant 0 : index
    %c0_1 = arith.constant 0 : index
    %0 = vector.load %arg2[%c0, %c0_0, %c0_1] : memref<1x8x32xbf16, #tpu.memory_space<vmem>>, vector<1x8x32xbf16>
    %1 = vector.shape_cast %0 : vector<1x8x32xbf16> to vector<8x32xbf16>
    %2 = arith.extf %1 : vector<8x32xbf16> to vector<8x32xf32>
    %c0_2 = arith.constant 0 : index
    %c0_3 = arith.constant 0 : index
    %3 = vector.load %arg3[%c0_2, %c0_3] : memref<1x32xf32, #tpu.memory_space<vmem>>, vector<1x32xf32>
    %c0_4 = arith.constant 0 : index
    %c0_5 = arith.constant 0 : index
    %4 = vector.load %arg4[%c0_4, %c0_5] : memref<1x32xf32, #tpu.memory_space<vmem>>, vector<1x32xf32>
    %cst = arith.constant dense<0.000000e+00> : vector<8xf32>
    %5 = vector.multi_reduction <add>, %2, %cst [1] : vector<8x32xf32> to vector<8xf32>
    %6 = vector.shape_cast %5 : vector<8xf32> to vector<8x1xf32>
    %cst_6 = arith.constant 3.200000e+01 : f32
    %7 = vector.broadcast %cst_6 : f32 to vector<8x1xf32>
    %8 = arith.divf %6, %7 : vector<8x1xf32>
    %9 = vector.broadcast %8 : vector<8x1xf32> to vector<8x32xf32>
    %10 = arith.subf %2, %9 : vector<8x32xf32>
    %11 = arith.mulf %10, %10 : vector<8x32xf32>
    %cst_7 = arith.constant dense<0.000000e+00> : vector<8xf32>
    %12 = vector.multi_reduction <add>, %11, %cst_7 [1] : vector<8x32xf32> to vector<8xf32>
    %13 = vector.shape_cast %12 : vector<8xf32> to vector<8x1xf32>
    %cst_8 = arith.constant 3.200000e+01 : f32
    %14 = vector.broadcast %cst_8 : f32 to vector<8x1xf32>
    %15 = arith.divf %13, %14 : vector<8x1xf32>
    %16 = vector.broadcast %8 : vector<8x1xf32> to vector<8x32xf32>
    %17 = arith.subf %2, %16 : vector<8x32xf32>
    %cst_9 = arith.constant 9.99999974E-6 : f32
    %18 = vector.broadcast %cst_9 : f32 to vector<8x1xf32>
    %19 = arith.addf %15, %18 : vector<8x1xf32>
    %20 = math.rsqrt %19 : vector<8x1xf32>
    %21 = vector.broadcast %20 : vector<8x1xf32> to vector<8x32xf32>
    %22 = arith.mulf %17, %21 : vector<8x32xf32>
    %23 = vector.broadcast %3 : vector<1x32xf32> to vector<8x32xf32>
    %24 = arith.mulf %22, %23 : vector<8x32xf32>
    %25 = vector.broadcast %4 : vector<1x32xf32> to vector<8x32xf32>
    %26 = arith.addf %24, %25 : vector<8x32xf32>
    %27 = arith.truncf %26 : vector<8x32xf32> to vector<8x32xbf16>
    %c0_10 = arith.constant 0 : index
    %c0_11 = arith.constant 0 : index
    %c0_12 = arith.constant 0 : index
    %28 = vector.load %arg5[%c0_10, %c0_11, %c0_12] : memref<1x8x32xbf16, #tpu.memory_space<vmem>>, vector<1x8x32xbf16>
    %29 = vector.shape_cast %28 : vector<1x8x32xbf16> to vector<8x32xbf16>
    %30 = vector.shape_cast %27 : vector<8x32xbf16> to vector<1x8x32xbf16>
    tpu.vector_store %arg5[%c0_10, %c0_11, %c0_12], %30 {strides = array<i32>} : memref<1x8x32xbf16, #tpu.memory_space<vmem>>, vector<1x8x32xbf16>,
    return
  }
  func.func @transform_0(%arg0: i32, %arg1: i32) -> (i32, i32, i32) {
    %c0_i32 = arith.constant 0 : i32
    %c0_i32_0 = arith.constant 0 : i32
    return %arg0, %arg1, %c0_i32 : i32, i32, i32
  }
  func.func @transform_1(%arg0: i32, %arg1: i32) -> (i32, i32) {
    %c0_i32 = arith.constant 0 : i32
    %c0_i32_0 = arith.constant 0 : i32
    %c0_i32_1 = arith.constant 0 : i32
    return %c0_i32, %c0_i32_0 : i32, i32
  }
  func.func @transform_2(%arg0: i32, %arg1: i32) -> (i32, i32) {
    %c0_i32 = arith.constant 0 : i32
    %c0_i32_0 = arith.constant 0 : i32
    %c0_i32_1 = arith.constant 0 : i32
    return %c0_i32, %c0_i32_0 : i32, i32
  }
  func.func @transform_3(%arg0: i32, %arg1: i32) -> (i32, i32, i32) {
    %c0_i32 = arith.constant 0 : i32
    %c0_i32_0 = arith.constant 0 : i32
    return %arg0, %arg1, %c0_i32 : i32, i32, i32
  }
}

module attributes {stable_mosaic.version = 11 : i64} {
  func.func @_head_kernel(%arg0: i32, %arg1: i32, %arg2: i32, %arg3: memref<1x8x32xbf16, #tpu.memory_space<vmem>>, %arg4: memref<32x64xbf16, #tpu.memory_space<vmem>>, %arg5: memref<1x8x64xf32, #tpu.memory_space<vmem>>) attributes {dimension_semantics = [#tpu.dimension_semantics<parallel>, #tpu.dimension_semantics<parallel>, #tpu.dimension_semantics<parallel>], iteration_bounds = array<i64: 1, 2, 1>, scalar_prefetch = 0 : i64, scratch_operands = 0 : i64, tpu.core_type = #tpu.core_type<tc>, window_params = [{transform_indices = @transform_0, window_bounds = array<i64: 1, 8, 32>}, {transform_indices = @transform_1, window_bounds = array<i64: 32, 64>}, {transform_indices = @transform_2, window_bounds = array<i64: 1, 8, 64>}]} {
    %c0 = arith.constant 0 : index
    %c0_0 = arith.constant 0 : index
    %c0_1 = arith.constant 0 : index
    %0 = vector.load %arg3[%c0, %c0_0, %c0_1] : memref<1x8x32xbf16, #tpu.memory_space<vmem>>, vector<1x8x32xbf16>
    %1 = vector.shape_cast %0 : vector<1x8x32xbf16> to vector<8x32xbf16>
    %c0_2 = arith.constant 0 : index
    %c0_3 = arith.constant 0 : index
    %2 = vector.load %arg4[%c0_2, %c0_3] : memref<32x64xbf16, #tpu.memory_space<vmem>>, vector<32x64xbf16>
    %cst = arith.constant dense<0.000000e+00> : vector<8x64xf32>
    %3 = tpu.matmul %1, %2, %cst {dimension_numbers = #tpu.dot_dimension_numbers<[1], [0], [0], [1], [0, 0, 1, 1], [], []>} : vector<8x32xbf16>, vector<32x64xbf16>, vector<8x64xf32> -> vector<8x64xf32>
    %c0_4 = arith.constant 0 : index
    %c0_5 = arith.constant 0 : index
    %c0_6 = arith.constant 0 : index
    %4 = vector.load %arg5[%c0_4, %c0_5, %c0_6] : memref<1x8x64xf32, #tpu.memory_space<vmem>>, vector<1x8x64xf32>
    %5 = vector.shape_cast %4 : vector<1x8x64xf32> to vector<8x64xf32>
    %6 = vector.shape_cast %3 : vector<8x64xf32> to vector<1x8x64xf32>
    tpu.vector_store %arg5[%c0_4, %c0_5, %c0_6], %6 {strides = array<i32>} : memref<1x8x64xf32, #tpu.memory_space<vmem>>, vector<1x8x64xf32>,
    return
  }
  func.func @transform_0(%arg0: i32, %arg1: i32, %arg2: i32) -> (i32, i32, i32) {
    %c0_i32 = arith.constant 0 : i32
    %c0_i32_0 = arith.constant 0 : i32
    return %arg1, %arg2, %c0_i32 : i32, i32, i32
  }
  func.func @transform_1(%arg0: i32, %arg1: i32, %arg2: i32) -> (i32, i32) {
    %c0_i32 = arith.constant 0 : i32
    %c0_i32_0 = arith.constant 0 : i32
    return %c0_i32, %arg0 : i32, i32
  }
  func.func @transform_2(%arg0: i32, %arg1: i32, %arg2: i32) -> (i32, i32, i32) {
    %c0_i32 = arith.constant 0 : i32
    return %arg1, %arg2, %arg0 : i32, i32, i32
  }
}

</mosaic_0001>

<bundles_post_ra>
// kernel: mini_gpt2_forward.14
= control target key start
LH: loop header
LB: loop body
LE: loop exit
PB: predicated region body
PF: predicated region fallthrough
CT: control target
= control target key end

     0   :  { %s388_s12 = smov 0   ;;  %s390_s13 = smov 0   ;;  %s427_s0 = inlined_call_operand.vmem [shape: bf16[2,8,32], index: 0, kind: input, shape index: {}]   ;;  %s428_s1 = inlined_call_operand.vmem [shape: f32[1,32], index: 1, kind: input, shape index: {}]   ;;  %s429_s2 = inlined_call_operand.vmem [shape: f32[1,32], index: 2, kind: input, shape index: {}]   ;;  %s430_s3 = inlined_call_operand.vmem [shape: bf16[2,8,32], index: 3, kind: output, shape index: {}]  }
   0x1   :  { %s392_s14 = smov 0  }
   0x2 LB: > { %s25_s15 = sadd.s32 1, %s362_s13  ;;  %p311_p0 = scmp.ge.s32.totalorder %s366_s14, 1  ;;  %s366_s14 = sphi %s392_s14, %s13_s14   ;;  %s362_s13 = sphi %s390_s13, %s432_s13   ;;  %s358_s12 = sphi %s388_s12, %s431_s12  }
   0x3   : > { %p27_p1 = scmp.ge.s32.totalorder %s25_s15, 2  ;;  %p155_p2 = scmp.lt.s32.totalorder %s366_s14, 3 }
   0x5   : > { %s434_s15 = smov (%p27_p1, %s25_s15), 0  ;;  %p156_p3 = pnand %p311_p0, %p155_p2 }
   0x6   : > { %p183_p4 = scmp.lt.s32.totalorder (!%p156_p3), %s358_s12, 1  ;;  %vm201_vm0 = vcmask (!%p156_p3), 261120   ;;  %v314_v12 = vld [vmem:[%s428_s1] ss:$0 sm:$0xff] (!%p156_p3)  ;;  %vm231_vm1 = vcmask (!%p156_p3), 257024  }
   0x7   : > { %159 = sbr.rel (%p156_p3) target bundleno = 336 (0x150), region = 32  ;;  %v315_v14 = vld [vmem:[%s429_s2] ss:$0 sm:$0xff] (!%p156_p3) }
   0xe   : > { %s436_s12 = smov (!%p183_p4, %s358_s12), 1 }
   0xf   : > { %s312_s16 = sshll.u32 %s436_s12, 2 }
  0x10   : > { %s189_s19 = scalar_lea.vmem %s427_s0, %s312_s16  ;;  %s196_s26 = scalar_lea.vmem %s430_s3, %s312_s16 }
  0x11   : > { %v197_v0 = vld [vmem:[%s189_s19] sm:$0xf] }
  0x12   : > { %v198_v1 = vunpack.c.l.bf16 %v197_v0 }
  0x14   : > { %v202_v2 = vsel %vm201_vm0, %v198_v1, 0.0 }
  0x15   : > { %203 = vadd.xlane.f32.xlu0 %v202_v2 }
  0xa2   : > { %v204_v3 = vpop.xlane.xlu0 %203 }
  0xa3   : > { %v206_v4 = vmul.f32 0.03125, %v204_v3 }
  0xa5   : > { %v207_v5 = vsub.f32 %v198_v1, %v206_v4 }
  0xa7   : > { %v208_v6 = vmul.f32 %v207_v5, %v207_v5 }
  0xa9   : > { %v209_v7 = vsel %vm201_vm0, %v208_v6, 0.0 }
  0xaa   : > { %210 = vadd.xlane.f32.xlu0 %v209_v7 }
 0x137   : > { %v211_v8 = vpop.xlane.xlu0 %210 }
 0x138   : > { %v212_v9 = vmul.f32 0.03125, %v211_v8 }
 0x13a   : > { %v213_v10 = vadd.f32 1e-05, %v212_v9 }
 0x13c   : > { %342 = vrsqrt.f32 %v213_v10 }
 0x146   : > { %v343_v11 = vpop.eup %342 }
 0x147   : > { %v215_v13 = vmul.f32 %v343_v11, %v207_v5 }
 0x149   : > { %v222_v15 = vmul.f32 %v314_v12, %v215_v13 }
 0x14b   : > { %v229_v16 = vadd.f32 %v315_v14, %v222_v15 }
 0x14d   : > { %v230_v17 = vpack.c.bf16 %v229_v16, %v229_v16 }
 0x14f   : > { %232 = vst.msk [vmem:[%s196_s26] sm:$0xf] %vm231_vm1, %v230_v17 }
 0x150 PF: > { %s13_s14 = sadd.s32 1, %s366_s14   ;;  %s431_s12 = smov %s362_s13 }
 0x151   : > { %p10_p5 = scmp.ge.s32.totalorder %s13_s14, 4   ;;  %s432_s13 = smov %s434_s15 }
 0x153   :  { %12 = sbr.rel (!%p10_p5) target bundleno = 2 (0x2), region = 62 }

// kernel: mini_gpt2_forward.8
= control target key start
LH: loop header
LB: loop body
LE: loop exit
PB: predicated region body
PF: predicated region fallthrough
CT: control target
= control target key end

     0   :  { %s743_s24 = smov 0   ;;  %s745_s25 = smov 0   ;;  %s806_s0 = inlined_call_operand.vmem [shape: bf16[2,8,32], index: 0, kind: input, shape index: {}]   ;;  %s807_s1 = inlined_call_operand.vmem [shape: f32[1,32], index: 1, kind: input, shape index: {}]   ;;  %s808_s2 = inlined_call_operand.vmem [shape: f32[1,32], index: 2, kind: input, shape index: {}]   ;;  %s809_s3 = inlined_call_operand.vmem [shape: bf16[32,96], index: 3, kind: input, shape index: {}]   ;;  %s810_s4 = inlined_call_operand.vmem [shape: f32[1,96], index: 4, kind: input, shape index: {}]   ;;  %s811_s5 = inlined_call_operand.vmem [shape: bf16[2,8,32], index: 5, kind: output, shape index: {0}]   ;;  %s812_s6 = inlined_call_operand.vmem [shape: bf16[2,8,32], index: 6, kind: output, shape index: {1}]   ;;  %s813_s7 = inlined_call_operand.vmem [shape: bf16[2,8,32], index: 7, kind: output, shape index: {2}]  }
   0x1   :  { %s747_s26 = smov 0  }
   0x2 LB: > { %s30_s27 = sadd.s32 1, %s693_s25  ;;  %p617_p0 = scmp.ge.s32.totalorder %s697_s26, 1  ;;  %s697_s26 = sphi %s747_s26, %s18_s26   ;;  %s693_s25 = sphi %s745_s25, %s815_s25   ;;  %s689_s24 = sphi %s743_s24, %s814_s24  }
   0x3   : > { %p32_p1 = scmp.ge.s32.totalorder %s30_s27, 2  ;;  %p264_p2 = scmp.lt.s32.totalorder %s697_s26, 3 }
   0x5   : > { %s817_s27 = smov (%p32_p1, %s30_s27), 0  ;;  %p265_p3 = pnand %p617_p0, %p264_p2 }
   0x6   : > { %p314_p4 = scmp.lt.s32.totalorder (!%p265_p3), %s689_s24, 1  ;;  %vm347_vm0 = vcmask (!%p265_p3), 261120   ;;  %v671_v8 = vld [vmem:[%s809_s3] sm:$0xff] (!%p265_p3)   ;;  %v699_v9 = vmov (!%p265_p3), 0.0   ;;  %v672_v10 = vld [vmem:[%s809_s3 + $0x8] sm:$0xff] (!%p265_p3)   ;;  %vm700_vm1 = vmmov (!%p265_p3), 0  }
   0x7   : > { %268 = sbr.rel (%p265_p3) target bundleno = 671 (0x29f), region = 40  ;;  %635 = vmatprep.subr.bf16.mxu0 (!%p265_p3), %v699_v9  ;;  %639 = vmatprep.mubr.msk.bf16.mxu0 (!%p265_p3), %vm700_vm1, %v699_v9  ;;  %v622_v15 = vld [vmem:[%s807_s1] ss:$0 sm:$0xff] (!%p265_p3)  ;;  %vm444_vm2 = vcmask (!%p265_p3), 257024   ;;  %s701_s22 = smov (!%p265_p3), 96  }
   0x8   : > { %636 = vmatpush3.bf16.msra.mxu0 (!%p265_p3), %v671_v8  ;;  %v623_v17 = vld [vmem:[%s808_s2] ss:$0 sm:$0xff] (!%p265_p3)  ;;  %s702_s23 = smov (!%p265_p3), 64  }
   0x9   : > { %637 = vmatprep.subr.bf16.mxu0 (!%p265_p3), %v699_v9  ;;  %v624_v21 = vld [vmem:[%s810_s4] ss:$0 sm:$0xff] (!%p265_p3) }
   0xc   : > { %638 = vmatpush3.bf16.msra.mxu0 (!%p265_p3), %v672_v10 }
   0xe   : > { %s819_s24 = smov (!%p314_p4, %s689_s24), 1 }
   0xf   : > { %s761_s28 = sshll.u32 %s819_s24, 2 }
  0x10   : > { %s320_s8 = scalar_lea.vmem %s806_s0, %s761_s28  ;;  %s327_s21 = scalar_lea.vmem %s811_s5, %s761_s28 }
  0x11   : > { %v343_v0 = vld [vmem:[%s320_s8] sm:$0xf]  ;;  %s334_s30 = scalar_lea.vmem %s812_s6, %s761_s28  ;;  %s341_s10 = scalar_lea.vmem %s813_s7, %s761_s28 }
  0x12   : > { %v344_v1 = vunpack.c.l.bf16 %v343_v0 }
  0x14   : > { %v348_v2 = vsel %vm347_vm0, %v344_v1, 0.0 }
  0x15   : > { %349 = vadd.xlane.f32.xlu0 %v348_v2 }
  0xa2   : > { %v350_v3 = vpop.xlane.xlu0 %349 }
  0xa3   : > { %v352_v4 = vmul.f32 0.03125, %v350_v3 }
  0xa5   : > { %v353_v5 = vsub.f32 %v344_v1, %v352_v4 }
  0xa7   : > { %v354_v6 = vmul.f32 %v353_v5, %v353_v5 }
  0xa9   : > { %v355_v7 = vsel %vm347_vm0, %v354_v6, 0.0 }
  0xaa   : > { %356 = vadd.xlane.f32.xlu0 %v355_v7 }
 0x137   : > { %v357_v11 = vpop.xlane.xlu0 %356 }
 0x138   : > { %v358_v12 = vmul.f32 0.03125, %v357_v11 }
 0x13a   : > { %v359_v13 = vadd.f32 1e-05, %v358_v12 }
 0x13c   : > { %673 = vrsqrt.f32 %v359_v13 }
 0x146   : > { %v674_v14 = vpop.eup %673 }
 0x147   : > { %v361_v16 = vmul.f32 %v674_v14, %v353_v5 }
 0x149   : > { %v368_v18 = vmul.f32 %v622_v15, %v361_v16 }
 0x14b   : > { %v375_v19 = vadd.f32 %v623_v17, %v368_v18 }
 0x14d   : > { %v376_v20 = vpack.c.bf16 %v375_v19, %v375_v19 }
 0x14f   : > { %640 = vmatmul.mubr.msk.bf16.vlgmr.msra.gmra.mrb[0].mxu0 %vm347_vm0, %v376_v20 }
 0x222   : > { %v437_v22 = vpop.f32.mrb[0].mxu0 }
 0x223   : > { %v438_v23 = vadd.f32 %v624_v21, %v437_v22  ;;  %v641_v24 = vpop.f32.mrb[1].mxu0 }
 0x224   : > { %v440_v25 = vpop.f32.mrb[2].mxu0 }
 0x225   : > { %v443_v26 = vpack.c.bf16 %v438_v23, %v438_v23  ;;  %v642_v27 = vpop.f32.mrb[3].mxu0 }
 0x227   : > { %449 = vrot.lane.b32.xlu1 %v443_v26, %s701_s22  ;;  %445 = vst.msk [vmem:[%s327_s21] sm:$0xf] %vm444_vm2, %v443_v26 }
 0x22b   : > { %453 = vrot.lane.b32.xlu1 %v443_v26, %s702_s23 }
 0x299   : > { %v450_v28 = vpop.permute.xlu1 %449 }
 0x29a   : > { %452 = vst.msk [vmem:[%s334_s30] sm:$0xf] %vm444_vm2, %v450_v28 }
 0x29d   : > { %v454_v29 = vpop.permute.xlu1 %453 }
 0x29e   : > { %456 = vst.msk [vmem:[%s341_s10] sm:$0xf] %vm444_vm2, %v454_v29 }
 0x29f PF: > { %s18_s26 = sadd.s32 1, %s697_s26   ;;  %s814_s24 = smov %s693_s25 }
 0x2a0   : > { %p15_p5 = scmp.ge.s32.totalorder %s18_s26, 4   ;;  %s815_s25 = smov %s817_s27 }
 0x2a2   :  { %17 = sbr.rel (!%p15_p5) target bundleno = 2 (0x2), region = 94 }

// kernel: mini_gpt2_forward.10
= control target key start
LH: loop header
LB: loop body
LE: loop exit
PB: predicated region body
PF: predicated region fallthrough
CT: control target
= control target key end

     0   :  { %s1000_s13 = smov 0   ;;  %s1002_s14 = smov 0   ;;  %s1116_s0 = inlined_call_operand.vmem [shape: bf16[2,8,32], index: 0, kind: input, shape index: {}]   ;;  %s1117_s1 = inlined_call_operand.vmem [shape: bf16[2,8,32], index: 1, kind: input, shape index: {}]   ;;  %s1118_s2 = inlined_call_operand.vmem [shape: bf16[32,32], index: 2, kind: input, shape index: {}]   ;;  %s1119_s3 = inlined_call_operand.vmem [shape: f32[1,32], index: 3, kind: input, shape index: {}]   ;;  %s1120_s4 = inlined_call_operand.vmem [shape: f32[1,32], index: 4, kind: input, shape index: {}]   ;;  %s1121_s5 = inlined_call_operand.vmem [shape: f32[1,32], index: 5, kind: input, shape index: {}]   ;;  %s1122_s6 = inlined_call_operand.vmem [shape: bf16[32,128], index: 6, kind: input, shape index: {}]   ;;  %s1123_s7 = inlined_call_operand.vmem [shape: f32[1,128], index: 7, kind: input, shape index: {}]   ;;  %s1124_s8 = inlined_call_operand.vmem [shape: bf16[128,32], index: 8, kind: input, shape index: {}]   ;;  %s1125_s9 = inlined_call_operand.vmem [shape: f32[1,32], index: 9, kind: input, shape index: {}]   ;;  %s1126_s10 = inlined_call_operand.vmem [shape: bf16[2,8,32], index: 10, kind: output, shape index: {}]  }
   0x1   :  { %s1004_s15 = smov 0  }
   0x2 LB: > { %s32_s16 = sadd.s32 1, %s937_s14  ;;  %p801_p0 = scmp.ge.s32.totalorder %s941_s15, 1  ;;  %s941_s15 = sphi %s1004_s15, %s20_s15   ;;  %s937_s14 = sphi %s1002_s14, %s1128_s14   ;;  %s933_s13 = sphi %s1000_s13, %s1127_s13  }
   0x3   : > { %p34_p1 = scmp.ge.s32.totalorder %s32_s16, 2  ;;  %p344_p2 = scmp.lt.s32.totalorder %s941_s15, 3 }
   0x5   : > { %s1130_s16 = smov (%p34_p1, %s32_s16), 0  ;;  %p345_p3 = pnand %p801_p0, %p344_p2 }
   0x6   : > { %v903_v0 = vld [vmem:[%s1118_s2] sm:$0xff] (!%p345_p3)   ;;  %v943_v1 = vmov (!%p345_p3), 0.0   ;;  %v904_v2 = vld [vmem:[%s1118_s2 + $0x8] sm:$0xff] (!%p345_p3)   ;;  %vm944_vm0 = vmmov (!%p345_p3), 0   ;;  %p393_p4 = scmp.lt.s32.totalorder (!%p345_p3), %s933_s13, 1  ;;  %vm439_vm1 = vcmask (!%p345_p3), 261120  }
   0x7   : > { %348 = sbr.rel (%p345_p3) target bundleno = 1011 (0x3f3), region = 60  ;;  %841 = vmatprep.subr.bf16.mxu1 (!%p345_p3), %v943_v1  ;;  %857 = vmatprep.subr.bf16.mxu0 (!%p345_p3), %v943_v1  ;;  %v805_v5 = vld [vmem:[%s1119_s3] ss:$0 sm:$0xff] (!%p345_p3)  ;;  %v906_v20 = vld [vmem:[%s1122_s6 + $0x8] sm:$0xff] (!%p345_p3)   ;;  %v909_v33 = vld [vmem:[%s1124_s8 + $0x10] sm:$0xff] (!%p345_p3)   ;;  %vm706_vm2 = vcmask (!%p345_p3), 257024  }
   0x8   : > { %842 = vmatpush3.bf16.msra.mxu1 (!%p345_p3), %v903_v0  ;;  %845 = vmatprep.mubr.msk.bf16.mxu1 (!%p345_p3), %vm944_vm0, %v943_v1  ;;  %v905_v19 = vld [vmem:[%s1122_s6] sm:$0xff] (!%p345_p3)   ;;  %v908_v32 = vld [vmem:[%s1124_s8 + $0x8] sm:$0xff] (!%p345_p3)   ;;  %v910_v34 = vld [vmem:[%s1124_s8 + $0x18] sm:$0xff] (!%p345_p3)  }
   0x9   : > { %843 = vmatprep.subr.bf16.mxu1 (!%p345_p3), %v943_v1  ;;  %873 = vmatprep.mubr.msk.bf16.mxu0 (!%p345_p3), %vm944_vm0, %v943_v1  ;;  %v809_v25 = vld [vmem:[%s1120_s4] ss:$0 sm:$0xff] (!%p345_p3)  ;;  %v912_v36 = vld [vmem:[%s1124_s8 + $0x28] sm:$0xff] (!%p345_p3)   ;;  %v913_v37 = vld [vmem:[%s1124_s8 + $0x30] sm:$0xff] (!%p345_p3)  }
   0xa   : > { %v810_v27 = vld [vmem:[%s1121_s5] ss:$0 sm:$0xff] (!%p345_p3)  ;;  %v914_v38 = vld [vmem:[%s1124_s8 + $0x38] sm:$0xff] (!%p345_p3)  }
   0xb   : > { %v907_v31 = vld [vmem:[%s1124_s8] sm:$0xff] (!%p345_p3)  }
   0xc   : > { %844 = vmatpush3.bf16.msra.mxu1 (!%p345_p3), %v904_v2  ;;  %858 = vmatpush3.bf16.msra.mxu0 (!%p345_p3), %v907_v31  ;;  %v911_v35 = vld [vmem:[%s1124_s8 + $0x20] sm:$0xff] (!%p345_p3)  }
   0xd   : > { %849 = vmatprep.subr.bf16.mxu1 (!%p345_p3), %v943_v1  ;;  %859 = vmatprep.subr.bf16.mxu0 (!%p345_p3), %v943_v1  ;;  %v811_v39 = vld [vmem:[%s1123_s7] ss:$0 sm:$0xff] (!%p345_p3) }
   0xe   : > { %s1132_s13 = smov (!%p393_p4, %s933_s13), 1  ;;  %v815_v55 = vld [vmem:[%s1125_s9] ss:$0 sm:$0xff] }
   0xf   : > { %s1029_s21 = sshll.u32 %s1132_s13, 2 }
  0x10   : > { %s406_s24 = scalar_lea.vmem %s1117_s1, %s1029_s21  ;;  %s399_s27 = scalar_lea.vmem %s1116_s0, %s1029_s21  ;;  %860 = vmatpush3.bf16.msra.mxu0 %v908_v32 }
  0x11   : > { %v415_v3 = vld [vmem:[%s406_s24] sm:$0xf]  ;;  %861 = vmatprep.subr.bf16.mxu0 %v943_v1  ;;  %s413_s28 = scalar_lea.vmem %s1126_s10, %s1029_s21 }
  0x12   : > { %846 = vmatmul.mubr.msk.bf16.vlgmr.msra.gmra.mrb[0].mxu1 %vm439_vm1, %v415_v3  ;;  %v483_v4 = vld [vmem:[%s399_s27] sm:$0xf] }
  0x13   : > { %853 = vmatprep.mubr.msk.bf16.mxu1 %vm944_vm0, %v943_v1  ;;  %v484_v6 = vunpack.c.l.bf16 %v483_v4  ;;  %850 = vmatpush3.bf16.msra.mxu1 %v905_v19 }
  0x14   : > { %851 = vmatprep.subr.bf16.mxu1 %v943_v1  ;;  %862 = vmatpush3.bf16.msra.mxu0 %v909_v33 }
  0x15   : > { %863 = vmatprep.subr.bf16.mxu0 %v943_v1 }
  0x17   : > { %852 = vmatpush3.bf16.msra.mxu1 %v906_v20 }
  0x18   : > { %864 = vmatpush3.bf16.msra.mxu0 %v910_v34 }
  0x19   : > { %865 = vmatprep.subr.bf16.mxu0 %v943_v1 }
  0x1c   : > { %866 = vmatpush3.bf16.msra.mxu0 %v911_v35 }
  0x1d   : > { %867 = vmatprep.subr.bf16.mxu0 %v943_v1 }
  0x20   : > { %868 = vmatpush3.bf16.msra.mxu0 %v912_v36 }
  0x21   : > { %869 = vmatprep.subr.bf16.mxu0 %v943_v1 }
  0x24   : > { %870 = vmatpush3.bf16.msra.mxu0 %v913_v37 }
  0x25   : > { %871 = vmatprep.subr.bf16.mxu0 %v943_v1 }
  0x28   : > { %872 = vmatpush3.bf16.msra.mxu0 %v914_v38 }
  0xe5   : > { %v477_v7 = vpop.f32.mrb[0].mxu1 }
  0xe6   : > { %v478_v8 = vadd.f32 %v805_v5, %v477_v7  ;;  %v847_v9 = vpop.f32.mrb[1].mxu1 }
  0xe7   : > { %v480_v10 = vpop.f32.mrb[2].mxu1 }
  0xe8   : > { %v1045_v11 = vadd.f32 %v484_v6, %v478_v8  ;;  %v848_v12 = vpop.f32.mrb[3].mxu1 }
  0xea   : > { %v488_v13 = vsel %vm439_vm1, %v1045_v11, 0.0 }
  0xeb   : > { %489 = vadd.xlane.f32.xlu0 %v488_v13 }
 0x178   : > { %v490_v14 = vpop.xlane.xlu0 %489 }
 0x179   : > { %v492_v15 = vmul.f32 0.03125, %v490_v14 }
 0x17b   : > { %v493_v16 = vsub.f32 %v1045_v11, %v492_v15 }
 0x17d   : > { %v494_v17 = vmul.f32 %v493_v16, %v493_v16 }
 0x17f   : > { %v495_v18 = vsel %vm439_vm1, %v494_v17, 0.0 }
 0x180   : > { %496 = vadd.xlane.f32.xlu0 %v495_v18 }
 0x20d   : > { %v497_v21 = vpop.xlane.xlu0 %496 }
 0x20e   : > { %v498_v22 = vmul.f32 0.03125, %v497_v21 }
 0x210   : > { %v499_v23 = vadd.f32 1e-05, %v498_v22 }
 0x212   : > { %915 = vrsqrt.f32 %v499_v23 }
 0x21c   : > { %v916_v24 = vpop.eup %915 }
 0x21d   : > { %v501_v26 = vmul.f32 %v916_v24, %v493_v16 }
 0x21f   : > { %v508_v28 = vmul.f32 %v809_v25, %v501_v26 }
 0x221   : > { %v515_v29 = vadd.f32 %v810_v27, %v508_v28 }
 0x223   : > { %v516_v30 = vpack.c.bf16 %v515_v29, %v515_v29 }
 0x225   : > { %854 = vmatmul.mubr.msk.bf16.vlgmr.msra.gmra.mrb[4].mxu1 %vm439_vm1, %v516_v30 }
 0x2f8   : > { %v577_v40 = vpop.f32.mrb[4].mxu1 }
 0x2f9   : > { %v578_v41 = vadd.f32 %v811_v39, %v577_v40  ;;  %v855_v42 = vpop.f32.mrb[5].mxu1 }
 0x2fa   : > { %v580_v43 = vpop.f32.mrb[6].mxu1 }
 0x2fb   : > { %v583_v44 = vmul.f32 %v578_v41, %v578_v41  ;;  %v856_v45 = vpop.f32.mrb[7].mxu1 }
 0x2fd   : > { %v584_v46 = vmul.f32 %v583_v44, %v578_v41 }
 0x2ff   : > { %v585_v47 = vmul.f32 0.044715, %v584_v46 }
 0x301   : > { %v586_v48 = vadd.f32 %v585_v47, %v578_v41 }
 0x303   : > { %v587_v49 = vmul.f32 0.7978846, %v586_v48 }
 0x305   : > { %917 = vtanh.f32 %v587_v49 }
 0x30f   : > { %v918_v50 = vpop.eup %917 }
 0x310   : > { %v589_v51 = vadd.f32 1.0, %v918_v50 }
 0x312   : > { %v590_v52 = vmul.f32 0.5, %v589_v51 }
 0x314   : > { %v591_v53 = vmul.f32 %v590_v52, %v578_v41 }
 0x316   : > { %v592_v54 = vpack.c.bf16 %v591_v53, %v591_v53 }
 0x318   : > { %874 = vmatmul.mubr.bf16.vlgmr.msra.gmra.mrb[0].mxu0 %v592_v54 }
 0x3eb   : > { %v698_v56 = vpop.f32.mrb[0].mxu0 }
 0x3ec   : > { %v699_v57 = vadd.f32 %v815_v55, %v698_v56  ;;  %v875_v58 = vpop.f32.mrb[1].mxu0 }
 0x3ed   : > { %v701_v59 = vpop.f32.mrb[2].mxu0 }
 0x3ee   : > { %v704_v60 = vadd.f32 %v699_v57, %v1045_v11  ;;  %v876_v61 = vpop.f32.mrb[3].mxu0 }
 0x3f0   : > { %v705_v62 = vpack.c.bf16 %v704_v60, %v704_v60 }
 0x3f2   : > { %707 = vst.msk [vmem:[%s413_s28] sm:$0xf] %vm706_vm2, %v705_v62 }
 0x3f3 PF: > { %s20_s15 = sadd.s32 1, %s941_s15   ;;  %s1127_s13 = smov %s937_s14 }
 0x3f4   : > { %p17_p5 = scmp.ge.s32.totalorder %s20_s15, 4   ;;  %s1128_s14 = smov %s1130_s16 }
 0x3f6   :  { %19 = sbr.rel (!%p17_p5) target bundleno = 2 (0x2), region = 93 }

// kernel: mini_gpt2_forward.9
= control target key start
LH: loop header
LB: loop body
LE: loop exit
PB: predicated region body
PF: predicated region fallthrough
CT: control target
= control target key end

     0   :  { %s1673_s12 = smov 0   ;;  %s1675_s13 = smov 0   ;;  %s1806_s0 = inlined_call_operand.vmem [shape: bf16[2,8,32], index: 0, kind: input, shape index: {}]   ;;  %s1807_s1 = inlined_call_operand.vmem [shape: bf16[2,8,32], index: 1, kind: input, shape index: {}]   ;;  %s1808_s2 = inlined_call_operand.vmem [shape: bf16[2,8,32], index: 2, kind: input, shape index: {}]   ;;  %s1809_s3 = inlined_call_operand.vmem [shape: bf16[2,8,32], index: 3, kind: output, shape index: {}]  }
   0x1   :  { %s1677_s14 = smov 0  }
   0x2 LB: > { %s32_s15 = sadd.s32 1, %s1639_s13  ;;  %p1469_p0 = scmp.ge.s32.totalorder %s1643_s14, 1  ;;  %s1643_s14 = sphi %s1677_s14, %s13_s14   ;;  %s1639_s13 = sphi %s1675_s13, %s1811_s13   ;;  %s1635_s12 = sphi %s1673_s12, %s1810_s12  }
   0x3   : > { %p34_p1 = scmp.ge.s32.totalorder %s32_s15, 2  ;;  %p197_p2 = scmp.lt.s32.totalorder %s1643_s14, 3 }
   0x5   : > { %s1813_s15 = smov (%p34_p1, %s32_s15), 0  ;;  %p198_p3 = pnand %p1469_p0, %p197_p2 }
   0x6   : > { %p245_p4 = scmp.lt.s32.totalorder (!%p198_p3), %s1635_s12, 1  ;;  %v1645_v0 = vmov (!%p198_p3), 0.0   ;;  %vm1646_vm0 = vmmov (!%p198_p3), 0   ;;  %vm792_vm1 = vcmask (!%p198_p3), 64512   ;;  %s1647_s23 = smov (!%p198_p3), 120   ;;  %v778_v8 = vlaneseq (!%p198_p3) }
   0x7   : > { %201 = sbr.rel (%p198_p3) target bundleno = 1172 (0x494), region = 32  ;;  %1515 = vmatprep.subr.bf16.mxu0 (!%p198_p3), %v1645_v0  ;;  %1517 = vmatprep.mubr.msk.bf16.mxu0 (!%p198_p3), %vm1646_vm0, %v1645_v0  ;;  %s1648_s24 = smov (!%p198_p3), 112   ;;  %vm860_vm3 = vcmask (!%p198_p3), 1043456   ;;  %vm1287_vm4 = vcmask (!%p198_p3), 130048   ;;  %vm1290_vm5 = vcmask (!%p198_p3), 195584   ;;  %vm1294_vm6 = vcmask (!%p198_p3), 257024  }
   0x8   : > { %1521 = vmatprep.subr.bf16.mxu1 (!%p198_p3), %v1645_v0  ;;  %1523 = vmatprep.mubr.msk.bf16.mxu1 (!%p198_p3), %vm1646_vm0, %v1645_v0  ;;  %s1649_s25 = smov (!%p198_p3), 104   ;;  %v1717_v9 = vshrl.u32 (!%p198_p3), %v778_v8, 7  ;;  %v1719_v10 = vand.u32 (!%p198_p3), 127, %v778_v8  ;;  %s1650_s29 = smov (!%p198_p3), 8  }
   0x9   : > { %s1651_s30 = smov (!%p198_p3), 16   ;;  %s1652_s4 = smov (!%p198_p3), 24  }
   0xa   : > { %vm782_vm2 = vcmp.ge.s32.totalorder (!%p198_p3), %v1717_v9, %v1719_v10 }
   0xe   : > { %s1815_s12 = smov (!%p245_p4, %s1635_s12), 1 }
   0xf   : > { %s1697_s16 = sshll.u32 %s1815_s12, 2 }
  0x10   : > { %s261_s19 = scalar_lea.vmem %s1807_s1, %s1697_s16  ;;  %s254_s22 = scalar_lea.vmem %s1806_s0, %s1697_s16 }
  0x11   : > { %v788_v1 = vld [vmem:[%s261_s19] sm:$0xf]  ;;  %s268_s28 = scalar_lea.vmem %s1808_s2, %s1697_s16  ;;  %s278_s7 = scalar_lea.vmem %s1809_s3, %s1697_s16 }
  0x12   : > { %v280_v2 = vld [vmem:[%s254_s22] sm:$0xf]  ;;  %v797_v3 = vsel %vm792_vm1, %v788_v1, 0  ;;  %v1489_v7 = vcombine.low %v788_v1, %v788_v1 }
  0x13   : > { %v281_v4 = vunpack.c.l.bf16 %v280_v2  ;;  %1516 = vmatpush3.bf16.xpose.msra.mxu0 %v797_v3  ;;  %v791_v17 = vld [vmem:[%s268_s28] sm:$0xf] }
  0x14   : > { %1533 = vmatprep.subr.bf16.mxu0 %v1645_v0  ;;  %v862_v18 = vsel %vm860_vm3, %v791_v17, 0  ;;  %v1491_v55 = vcombine.low %v791_v17, %v791_v17 }
  0x15   : > { %v282_v5 = vmul.f32 0.35355338, %v281_v4  ;;  %1522 = vmatpush3.bf16.msra.mxu1 %v862_v18 }
  0x16   : > { %1527 = vmatprep.subr.bf16.mxu1 %v1645_v0 }
  0x17   : > { %v283_v6 = vpack.c.bf16 %v282_v5, %v282_v5 }
  0x19   : > { %906 = vrot.lane.b32.xlu1 %v283_v6, %s1647_s23 }
  0x1a   : > { %1518 = vmatmul.mubr.msk.bf16.vlgmr.msra.gmra.mrb[0].mxu0 %vm792_vm1, %v283_v6 }
  0x1b   : > { %1535 = vmatprep.mubr.msk.bf16.mxu0 %vm1646_vm0, %v1645_v0 }
  0x1d   : > { %1031 = vrot.lane.b32.xlu1 %v1489_v7, %s1648_s24 }
  0x21   : > { %1029 = vrot.lane.b32.xlu1 %v283_v6, %s1648_s24 }
  0x25   : > { %1148 = vrot.lane.b32.xlu1 %v1489_v7, %s1649_s25 }
  0x29   : > { %1146 = vrot.lane.b32.xlu1 %v283_v6, %s1649_s25 }
  0x8b   : > { %v907_v25 = vpop.permute.xlu1 %906 }
  0x8f   : > { %v1032_v28 = vpop.permute.xlu1 %1031 }
  0x90   : > { %v1037_v29 = vsel %vm792_vm1, %v1032_v28, 0 }
  0x93   : > { %v1030_v30 = vpop.permute.xlu1 %1029 }
  0x97   : > { %v1149_v31 = vpop.permute.xlu1 %1148 }
  0x98   : > { %v1154_v32 = vsel %vm792_vm1, %v1149_v31, 0 }
  0x9b   : > { %v1147_v33 = vpop.permute.xlu1 %1146 }
  0xed   : > { %v833_v11 = vpop.f32.mrb[0].mxu0 }
  0xee   : > { %v839_v12 = vsel %vm782_vm2, %v833_v11, -1e+30  ;;  %v1519_v13 = vpop.f32.mrb[1].mxu0 }
  0xef   : > { %v836_v14 = vpop.f32.mrb[2].mxu0  ;;  %v840_v15 = vsel %vm792_vm1, %v839_v12, -inf }
  0xf0   : > { %841 = vmax.xlane.f32.xlu0 %v840_v15  ;;  %v1520_v16 = vpop.f32.mrb[3].mxu0 }
 0x106   : > { %911 = vrot.lane.b32.xlu0 %v1489_v7, %s1647_s23 }
 0x17d   : > { %v842_v19 = vpop.xlane.xlu0 %841 }
 0x17e   : > { %v843_v20 = vmax.f32 %v842_v19, -1e+30 }
 0x180   : > { %v844_v21 = vsub.f32 %v839_v12, %v843_v20  ;;  %v847_v34 = vsub.f32 -1e+30, %v843_v20 }
 0x181   : > { %v912_v23 = vpop.permute.xlu0 %911 }
 0x182   : > { %v845_v22 = vmul.f32 1.442695, %v844_v21  ;;  %v917_v26 = vsel %vm792_vm1, %v912_v23, 0  ;;  %v848_v35 = vmul.f32 1.442695, %v847_v34 }
 0x184   : > { %1597 = vpow2.f32 %v845_v22 }
 0x185   : > { %1599 = vpow2.f32 %v848_v35 }
 0x18e   : > { %v1734_v24 = vpop.eup %1597 }
 0x18f   : > { %v856_v27 = vpack.c.bf16 %v1734_v24, %v1734_v24  ;;  %v1600_v36 = vpop.eup %1599 }
 0x190   : > { %v1753_v37 = vmul.f32 0.0, %v1600_v36 }
 0x191   : > { %1524 = vmatmul.mubr.msk.bf16.vlgmr.msra.gmra.mrb[0].mxu1 %vm792_vm1, %v856_v27  ;;  %v851_v27 = vsel %vm792_vm1, %v1734_v24, 0.0 }
 0x192   : > { %1528 = vmatpush3.bf16.xpose.msra.mxu1 %v917_v26  ;;  %1529 = vmatprep.mubr.msk.bf16.mxu1 %vm1646_vm0, %v1645_v0 }
 0x193   : > { %1539 = vmatprep.subr.bf16.mxu1 %v1645_v0 }
 0x199   : > { %1530 = vmatmul.mubr.msk.bf16.vlgmr.msra.gmra.mrb[4].mxu1 %vm792_vm1, %v907_v25 }
 0x19a   : > { %1540 = vmatpush3.bf16.xpose.msra.mxu1 %v1037_v29  ;;  %1541 = vmatprep.mubr.msk.bf16.mxu1 %vm1646_vm0, %v1645_v0 }
 0x19b   : > { %1551 = vmatprep.subr.bf16.mxu1 %v1645_v0 }
 0x1a1   : > { %1542 = vmatmul.mubr.msk.bf16.vlgmr.msra.gmra.mrb[8].mxu1 %vm792_vm1, %v1030_v30 }
 0x1a2   : > { %1552 = vmatpush3.bf16.xpose.msra.mxu1 %v1154_v32  ;;  %1553 = vmatprep.mubr.msk.bf16.mxu1 %vm1646_vm0, %v1645_v0 }
 0x1a9   : > { %1554 = vmatmul.mubr.msk.bf16.vlgmr.msra.gmra.mrb[12].mxu1 %vm792_vm1, %v1147_v33 }
 0x264   : > { %v898_v38 = vpop.f32.mrb[0].mxu1 }
 0x265   : > { %v1756_v39 = vadd.f32 %v898_v38, %v1753_v37  ;;  %v1525_v40 = vpop.f32.mrb[1].mxu1 }
 0x266   : > { %v901_v41 = vpop.f32.mrb[2].mxu1 }
 0x267   : > { %v1526_v42 = vpop.f32.mrb[3].mxu1 }
 0x26c   : > { %v953_v43 = vpop.f32.mrb[4].mxu1 }
 0x26d   : > { %v959_v44 = vsel %vm782_vm2, %v953_v43, -1e+30  ;;  %v1531_v45 = vpop.f32.mrb[5].mxu1 }
 0x26e   : > { %v956_v46 = vpop.f32.mrb[6].mxu1  ;;  %v960_v47 = vsel %vm792_vm1, %v959_v44, -inf }
 0x26f   : > { %961 = vmax.xlane.f32.xlu1 %v960_v47  ;;  %v1532_v48 = vpop.f32.mrb[7].mxu1 }
 0x274   : > { %v1073_v49 = vpop.f32.mrb[8].mxu1 }
 0x275   : > { %v1079_v50 = vsel %vm782_vm2, %v1073_v49, -1e+30  ;;  %v1543_v51 = vpop.f32.mrb[9].mxu1 }
 0x276   : > { %v1080_v52 = vsel %vm792_vm1, %v1079_v50, -inf  ;;  %v1076_v53 = vpop.f32.mrb[10].mxu1 }
 0x277   : > { %1081 = vmax.xlane.f32.xlu0 %v1080_v52  ;;  %v1544_v54 = vpop.f32.mrb[11].mxu1 }
 0x27c   : > { %v1190_v56 = vpop.f32.mrb[12].mxu1 }
 0x27d   : > { %v1555_v57 = vpop.f32.mrb[13].mxu1  ;;  %v1196_v60 = vsel %vm782_vm2, %v1190_v56, -1e+30 }
 0x27e   : > { %v1193_v58 = vpop.f32.mrb[14].mxu1  ;;  %v1197_v61 = vsel %vm792_vm1, %v1196_v60, -inf }
 0x27f   : > { %v1556_v59 = vpop.f32.mrb[15].mxu1 }
 0x280   : > { %1097 = vrot.lane.b32.xlu1 %v1491_v55, %s1648_s24 }
 0x28d   : > { %980 = vrot.lane.b32.xlu0 %v1491_v55, %s1647_s23 }
 0x2a4   : > { %1198 = vmax.xlane.f32.xlu1 %v1197_v61 }
 0x2b5   : > { %1214 = vrot.lane.b32.xlu1 %v1491_v55, %s1649_s25 }
 0x2fc   : > { %v962_v62 = vpop.xlane.xlu1 %961 }
 0x2fd   : > { %v963_v63 = vmax.f32 %v962_v62, -1e+30 }
 0x2ff   : > { %v964_v1 = vsub.f32 %v959_v44, %v963_v63 }
 0x300   : > { %v1098_v10 = vpop.permute.xlu1 %1097 }
 0x301   : > { %v965_v2 = vmul.f32 1.442695, %v964_v1  ;;  %v1103_v13 = vsel %vm860_vm3, %v1098_v10, 0 }
 0x303   : > { %1601 = vpow2.f32 %v965_v2 }
 0x304   : > { %v1082_v3 = vpop.xlane.xlu0 %1081 }
 0x305   : > { %v1083_v4 = vmax.f32 %v1082_v3, -1e+30 }
 0x307   : > { %v1084_v5 = vsub.f32 %v1079_v50, %v1083_v4  ;;  %v1087_v29 = vsub.f32 -1e+30, %v1083_v4 }
 0x308   : > { %v981_v6 = vpop.permute.xlu0 %980 }
 0x309   : > { %v1085_v7 = vmul.f32 1.442695, %v1084_v5  ;;  %v986_v8 = vsel %vm860_vm3, %v981_v6, 0  ;;  %v1088_v30 = vmul.f32 1.442695, %v1087_v29 }
 0x30a   : > { %1534 = vmatpush3.bf16.msra.mxu0 %v986_v8 }
 0x30b   : > { %1603 = vpow2.f32 %v1085_v7  ;;  %1545 = vmatprep.subr.bf16.mxu0 %v1645_v0 }
 0x30d   : > { %v1602_v9 = vpop.eup %1601 }
 0x30e   : > { %v971_v11 = vsel %vm792_vm1, %v1602_v9, 0.0  ;;  %v976_v12 = vpack.c.bf16 %v1602_v9, %v1602_v9 }
 0x30f   : > { %972 = vadd.xlane.f32.xlu0 %v971_v11 }
 0x310   : > { %1536 = vmatmul.mubr.msk.bf16.vlgmr.msra.gmra.mrb[4].mxu0 %vm792_vm1, %v976_v12 }
 0x311   : > { %1546 = vmatpush3.bf16.msra.mxu0 %v1103_v13  ;;  %1547 = vmatprep.mubr.msk.bf16.mxu0 %vm1646_vm0, %v1645_v0 }
 0x312   : > { %1557 = vmatprep.subr.bf16.mxu0 %v1645_v0 }
 0x315   : > { %v1604_v14 = vpop.eup %1603 }
 0x316   : > { %v1091_v15 = vsel %vm792_vm1, %v1604_v14, 0.0  ;;  %v1096_v16 = vpack.c.bf16 %v1604_v14, %v1604_v14 }
 0x317   : > { %1092 = vadd.xlane.f32.xlu1 %v1091_v15 }
 0x318   : > { %1548 = vmatmul.mubr.msk.bf16.vlgmr.msra.gmra.mrb[8].mxu0 %vm792_vm1, %v1096_v16 }
 0x319   : > { %1559 = vmatprep.mubr.msk.bf16.mxu0 %vm1646_vm0, %v1645_v0  ;;  %v967_v0 = vsub.f32 -1e+30, %v963_v63 }
 0x31b   : > { %v968_v28 = vmul.f32 1.442695, %v967_v0 }
 0x331   : > { %v1199_v17 = vpop.xlane.xlu1 %1198 }
 0x332   : > { %v1200_v18 = vmax.f32 %v1199_v17, -1e+30 }
 0x334   : > { %v1201_v19 = vsub.f32 %v1196_v60, %v1200_v18 }
 0x335   : > { %v1215_v20 = vpop.permute.xlu1 %1214 }
 0x336   : > { %v1202_v21 = vmul.f32 1.442695, %v1201_v19  ;;  %v1220_v22 = vsel %vm860_vm3, %v1215_v20, 0 }
 0x337   : > { %1558 = vmatpush3.bf16.msra.mxu0 %v1220_v22 }
 0x338   : > { %1605 = vpow2.f32 %v1202_v21 }
 0x339   : > { %1607 = vpow2.f32 %v968_v28 }
 0x33a   : > { %1609 = vpow2.f32 %v1088_v30 }
 0x342   : > { %v1606_v23 = vpop.eup %1605 }
 0x343   : > { %v1208_v25 = vsel %vm792_vm1, %v1606_v23, 0.0  ;;  %v1213_v26 = vpack.c.bf16 %v1606_v23, %v1606_v23  ;;  %v1608_v33 = vpop.eup %1607 }
 0x344   : > { %1209 = vadd.xlane.f32.xlu0 %v1208_v25  ;;  %v970_v34 = vmul.f32 0.0, %v1608_v33  ;;  %v1610_v40 = vpop.eup %1609 }
 0x345   : > { %1560 = vmatmul.mubr.msk.bf16.vlgmr.msra.gmra.mrb[12].mxu0 %vm792_vm1, %v1213_v26  ;;  %v1090_v24 = vmul.f32 0.0, %v1610_v40 }
 0x348   : > { %852 = vadd.xlane.f32.xlu0 %v851_v27 }
 0x39c   : > { %v973_v31 = vpop.xlane.xlu0 %972 }
 0x39d   : > { %v974_v38 = vadd.f32 %v973_v31, %v970_v34 }
 0x3a4   : > { %v1093_v41 = vpop.xlane.xlu1 %1092 }
 0x3a5   : > { %v1094_v42 = vadd.f32 %v1093_v41, %v1090_v24 }
 0x3d1   : > { %v1210_v32 = vpop.xlane.xlu0 %1209 }
 0x3d5   : > { %v853_v35 = vpop.xlane.xlu0 %852 }
 0x3d6   : > { %v854_v36 = vadd.f32 %v853_v35, %v1753_v37 }
 0x3d8   : > { %1611 = vrcp.f32 %v854_v36 }
 0x3d9   : > { %1613 = vrcp.f32 %v974_v38 }
 0x3da   : > { %1615 = vrcp.f32 %v1094_v42 }
 0x3e2   : > { %v1612_v43 = vpop.eup %1611 }
 0x3e3   : > { %v1022_v44 = vpop.f32.mrb[4].mxu0  ;;  %v1264_v45 = vmul.f32 %v1612_v43, %v1756_v39  ;;  %v1614_v48 = vpop.eup %1613  ;;  %v1204_v39 = vsub.f32 -1e+30, %v1200_v18 }
 0x3e4   : > { %v1028_v46 = vadd.f32 %v1022_v44, %v970_v34  ;;  %v1537_v47 = vpop.f32.mrb[5].mxu0  ;;  %v1616_v55 = vpop.eup %1615 }
 0x3e5   : > { %v1025_v49 = vpop.f32.mrb[6].mxu0  ;;  %v1205_v60 = vmul.f32 1.442695, %v1204_v39  ;;  %v1265_v10 = vpack.c.bf16 %v1264_v45, %v1264_v45 }
 0x3e6   : > { %v1267_v50 = vmul.f32 %v1614_v48, %v1028_v46  ;;  %v1538_v51 = vpop.f32.mrb[7].mxu0 }
 0x3e7   : > { %1617 = vpow2.f32 %v1205_v60 }
 0x3e8   : > { %v1268_v52 = vpack.c.bf16 %v1267_v50, %v1267_v50 }
 0x3ea   : > { %1276 = vrot.lane.b32.xlu1 %v1268_v52, %s1650_s29 }
 0x3eb   : > { %v1139_v37 = vpop.f32.mrb[8].mxu0 }
 0x3ec   : > { %v1145_v53 = vadd.f32 %v1139_v37, %v1090_v24  ;;  %v1549_v54 = vpop.f32.mrb[9].mxu0 }
 0x3ed   : > { %v1142_v56 = vpop.f32.mrb[10].mxu0 }
 0x3ee   : > { %v1270_v57 = vmul.f32 %v1616_v55, %v1145_v53  ;;  %v1550_v58 = vpop.f32.mrb[11].mxu0 }
 0x3f0   : > { %v1271_v59 = vpack.c.bf16 %v1270_v57, %v1270_v57 }
 0x3f1   : > { %v1618_v61 = vpop.eup %1617 }
 0x3f2   : > { %1279 = vrot.lane.b32.xlu0 %v1271_v59, %s1651_s30  ;;  %v1207_v62 = vmul.f32 0.0, %v1618_v61 }
 0x3f4   : > { %v1211_v63 = vadd.f32 %v1210_v32, %v1207_v62 }
 0x3f6   : > { %1619 = vrcp.f32 %v1211_v63 }
 0x400   : > { %v1620_v4 = vpop.eup %1619 }
 0x418   : > { %v1256_v1 = vpop.f32.mrb[12].mxu0 }
 0x419   : > { %v1262_v2 = vadd.f32 %v1256_v1, %v1207_v62  ;;  %v1561_v3 = vpop.f32.mrb[13].mxu0 }
 0x41a   : > { %v1259_v5 = vpop.f32.mrb[14].mxu0 }
 0x41b   : > { %v1273_v6 = vmul.f32 %v1620_v4, %v1262_v2  ;;  %v1562_v7 = vpop.f32.mrb[15].mxu0 }
 0x41d   : > { %v1274_v8 = vpack.c.bf16 %v1273_v6, %v1273_v6 }
 0x41f   : > { %1282 = vrot.lane.b32.xlu1 %v1274_v8, %s1652_s4 }
 0x45c   : > { %v1277_v9 = vpop.permute.xlu1 %1276 }
 0x45d   : > { %v1286_v12 = vsel %vm792_vm1, %v1265_v10, %v1277_v9 }
 0x464   : > { %v1280_v11 = vpop.permute.xlu0 %1279 }
 0x465   : > { %v1289_v13 = vsel %vm1287_vm4, %v1286_v12, %v1280_v11 }
 0x491   : > { %v1283_v14 = vpop.permute.xlu1 %1282 }
 0x492   : > { %v1292_v15 = vsel %vm1290_vm5, %v1289_v13, %v1283_v14 }
 0x493   : > { %1295 = vst.msk [vmem:[%s278_s7] sm:$0xf] %vm1294_vm6, %v1292_v15 }
 0x494 PF: > { %s13_s14 = sadd.s32 1, %s1643_s14   ;;  %s1810_s12 = smov %s1639_s13 }
 0x495   : > { %p10_p5 = scmp.ge.s32.totalorder %s13_s14, 4   ;;  %s1811_s13 = smov %s1813_s15 }
 0x497   :  { %12 = sbr.rel (!%p10_p5) target bundleno = 2 (0x2), region = 90 }

// kernel: mini_gpt2_forward.15
= control target key start
LH: loop header
LB: loop body
LE: loop exit
PB: predicated region body
PF: predicated region fallthrough
CT: control target
= control target key end

     0   :  { %7 = vsyncpa [#allocation3], 0  ;;  %s661_s0 = inlined_call_operand.vmem [shape: bf16[2,8,32], index: 0, kind: input, shape index: {}]   ;;  %s662_s1 = inlined_call_operand.vmem [shape: bf16[32,64], index: 1, kind: input, shape index: {}]   ;;  %s663_s2 = inlined_call_operand.hbm [shape: f32[2,8,64], index: 2, kind: output, shape index: {}]  }
   0x1   :  { %9 = vsyncpa [#allocation3 + $0x1], 0  ;;  %s543_s9 = smov 0   ;;  %s545_s10 = smov 0  }
   0x2   :  { %s547_s11 = smov 0   ;;  %s549_s12 = smov 0  }
   0x3   :  { %s551_s13 = smov 0   ;;  %s553_s14 = smov 0  }
   0x4 LB: > { %s360_s15 = sadd.s32 4294967295, %s523_s14   ;;  %s361_s16 = sadd.s32 4294967294, %s523_s14   ;;  %s523_s14 = sphi %s553_s14, %s15_s14   ;;  %s519_s13 = sphi %s551_s13, %s670_s13   ;;  %s515_s12 = sphi %s549_s12, %s669_s12   ;;  %s511_s11 = sphi %s547_s11, %s668_s11   ;;  %s507_s10 = sphi %s545_s10, %s667_s10   ;;  %s503_s9 = sphi %s543_s9, %s666_s9  }
   0x5   : > { %s30_s17 = sadd.s32 1, %s519_s13  ;;  %s99_s18 = sadd.s32 1, %s511_s11 }
   0x6   : > { %p32_p0 = scmp.ge.s32.totalorder %s30_s17, 2  ;;  %p109_p1 = scmp.ne.s32.totalorder %s511_s11, %s507_s10 }
   0x7   : > { %p110_p2 = scmp.eq.s32.totalorder %s360_s15, 1  ;;  %p115_p3 = scmp.ne.s32.totalorder %s507_s10, %s503_s9 }
   0x8   : > { %s672_s17 = smov (%p32_p0, %s30_s17), 0  ;;  %p116_p5 = scmp.eq.s32.totalorder %s361_s16, 1 }
   0x9   : > { %p583_p4 = por %p110_p2, %p109_p1  ;;  %s92_s20 = ssub.s32 %s519_s13, %s672_s17 }
   0xa   : > { %p365_p6 = scmp.ge.s32.totalorder %s523_s14, 1  ;;  %p97_p7 = scmp.eq.s32.totalorder %s92_s20, 0 }
   0xb   : > { %p590_p8 = por %p116_p5, %p115_p3  ;;  %p151_p9 = scmp.lt.s32.totalorder %s523_s14, 3 }
   0xc   : > { %s596_s22 = scalar_select %p97_p7, %s511_s11, %s99_s18  }
   0xd   : > { %p152_p10 = pnand %p365_p6, %p151_p9 }
   0xe   : > { %v443_v0 = vld [vmem:[%s662_s1] sm:$0xff] (!%p152_p10)   ;;  %v525_v1 = vmov (!%p152_p10), 0.0   ;;  %v444_v2 = vld [vmem:[%s662_s1 + $0x8] sm:$0xff] (!%p152_p10)   ;;  %vm526_vm0 = vmmov (!%p152_p10), 0   ;;  %p179_p11 = scmp.lt.s32.totalorder (!%p152_p10), %s515_s12, 1  ;;  %vm208_vm1 = vcmask (!%p152_p10), 261120  }
   0xf   : > { %155 = sbr.rel (%p152_p10) target bundleno = 254 (0xfe), region = 28  ;;  %378 = vmatprep.subr.bf16.mxu0 (!%p152_p10), %v525_v1  ;;  %382 = vmatprep.mubr.msk.bf16.mxu0 (!%p152_p10), %vm526_vm0, %v525_v1  ;;  %s176_s4 = sand.u32 (!%p152_p10), 1, %s507_s10   ;;  %vm252_vm2 = vcmask (!%p152_p10), 523264  }
  0x10   : > { %379 = vmatpush3.bf16.msra.mxu0 (!%p152_p10), %v443_v0  ;;  %s366_s5 = sshll.u32 (!%p152_p10), %s176_s4, 3  ;;  %s372_s6 = sshll.u32 (!%p152_p10), %s515_s12, 7 }
  0x11   : > { %380 = vmatprep.subr.bf16.mxu0 (!%p152_p10), %v525_v1  ;;  %s178_s7 = scalar_lea.vmem (!%p152_p10), [#allocation2], %s366_s5  ;;  %s614_s18 = scalar_lea.hbm (!%p152_p10), %s663_s2, %s372_s6 }
  0x12   : > { %s270_s8 = sshll.u32 (!%p152_p10), %s178_s7, 4  ;;  %s255_s20 = scalar_lea.sflag (!%p152_p10), [#allocation3], %s176_s4  ;;  %s616_s8 = int_to_ptr.vmem [resolvable:$true] %s270_s8 }
  0x13   : > { %s445_s23 = scalar_lea.vmem (!%p152_p10), %s616_s8, 128 }
  0x14   : > { %381 = vmatpush3.bf16.msra.mxu0 (!%p152_p10), %v444_v2  ;;  %p446_p12 = scmp.ne.s32.totalorder (!%p152_p10), %s616_s8, %s445_s23 }
  0x16   : > { %s180_s27 = scalar_select %p179_p11, %s515_s12, 1 }
  0x17   : > { %p447_p13 = pnand %p446_p12, %p583_p4  ;;  %s527_s12 = smov [#allocation2]  }
  0x18   : > { %s367_s28 = sshll.u32 %s180_s27, 2  ;;  %s449_s24 = sshll.u32 %s527_s12, 4  ;;  %s450_s24 = int_to_ptr.vmem [resolvable:$false] %s449_s24 }
  0x19   : > { %s185_s3 = scalar_lea.vmem %s661_s0, %s367_s28  ;;  %p448_p0 = pneg %p447_p13 }
  0x1a   : > { %v191_v3 = vld [vmem:[%s185_s3] sm:$0xf]  ;;  %s451_s25 = scalar_lea.vmem %s450_s24, 256  ;;  %p452_p1 = scmp.lt.s32.totalorder %s616_s8, %s450_s24 }
  0x1b   : > { %383 = vmatmul.mubr.msk.bf16.vlgmr.msra.gmra.mrb[0].mxu0 %vm208_vm1, %v191_v3  ;;  %p453_p2 = scmp.lt.s32.totalorder %s451_s25, %s445_s23 }
  0x1d   : > { %p454_p3 = por %p453_p2, %p452_p1 }
  0x1f   : > { %p455_p5 = pnand %p454_p3, %p448_p0 }
  0xee   : > { %v246_v4 = vpop.f32.mrb[0].mxu0 }
  0xef   : > { %253 = vst.msk [vmem:[%s178_s7] sm:$0xff] %vm252_vm2, %v246_v4  ;;  %v384_v5 = vpop.f32.mrb[1].mxu0 }
  0xf0   : > { %v249_v6 = vpop.f32.mrb[2].mxu0 }
  0xf1   : > { %458 = shalt.err (!%p455_p5)
}
  0xf2   : > { %s459_s26 = scalar_lea.hbm %s614_s18, 128  ;;  %s463_s29 = scalar_lea.hbm %s663_s2, 256 }
  0xf3   : > { %p460_p6 = scmp.ne.s32.totalorder %s614_s18, %s459_s26  ;;  %p464_p10 = scmp.lt.u32.totalorder %s614_s18, %s663_s2 }
  0xf4   : > { %p465_p11 = scmp.lt.u32.totalorder %s463_s29, %s459_s26  ;;  %p467_p13 = scmp.lt.u32.totalorder %s459_s26, %s614_s18 }
  0xf5   : > { %p461_p7 = pnand %p460_p6, %p583_p4 }
  0xf6   : > { %p466_p12 = por %p465_p11, %p464_p10 }
  0xf7   : > { %p462_p9 = pneg %p461_p7 }
  0xf8   : > { %p468_p0 = por %p467_p13, %p466_p12 }
  0xfa   : > { %p469_p1 = pnand %p468_p0, %p462_p9 }
  0xfc   : > { %472 = shalt.err (!%p469_p1)
}
  0xfd   : > { %386 = dma.vmem_to_hbm [thread:$0]  (%p583_p4), %s616_s8, 128, %s614_s18, %s255_s20   ;;  %v385_v7 = vpop.f32.mrb[3].mxu0 }
  0xfe PF: > { %p392_p2 = scmp.ge.s32.totalorder %s523_s14, 2  ;;  %s282_s4 = sand.u32 1, %s503_s9  }
  0xff   : > { %s283_s5 = scalar_lea.sflag [#allocation3], %s282_s4 }
 0x100   : > { %p389_p3 = pnand %p392_p2, %p590_p8 }
 0x102   : > { %498 = dma.done.wait (!%p389_p3), %s283_s5, 128  }
 0x103   : > { %500 = vsyncadd (!%p389_p3), %s283_s5, 4294967168  ;;  %s15_s14 = sadd.s32 1, %s523_s14   ;;  %s666_s9 = smov %s507_s10 }
 0x104   : > { %p12_p5 = scmp.ge.s32.totalorder %s15_s14, 4   ;;  %s667_s10 = smov %s511_s11 }
 0x105   : > { %s668_s11 = smov %s596_s22  ;;  %s669_s12 = smov %s519_s13 }
 0x106   : > { %s670_s13 = smov %s672_s17  ;;  %14 = sbr.rel (!%p12_p5) target bundleno = 4 (0x4), region = 66 }
 0x10d   :  { %288 = vsyncpa [#allocation3], 1 }
 0x10e   :  { %290 = vsyncpa [#allocation3 + $0x1], 1 }

</bundles_post_ra>
